<compile_context>
chip_gen: v5e
topology: v5e:2x2
jax: 0.10.0
libtpu: 0.0.40
codegen_flags: <defaults>
</compile_context>

<pallas_src>
import functools

import jax
import jax.numpy as jnp
from jax.experimental import pallas as pl
from jax.experimental.pallas import tpu as pltpu

INPUT_DIM = 1024
H1 = 512
H2 = 128
OUT_PAD = 128          # final projection zero-padded to a full lane width
BN_EPS = 1e-5


def _round_up(x, m):
    return (x + m - 1) // m * m


def _mlp_kernel(obj_ref, scn_ref,
                w1a_ref, w1b_ref, b1_ref,
                w2_ref, b2_ref,
                w3_ref, b3_ref,
                o_ref):
    # Layer 1: Linear(1024, 512) split as obj@W1a + scene@W1b (no HBM concat),
    # then ReLU.  BN1 is pre-folded into W2/b2.
    h1 = (jnp.dot(obj_ref[...], w1a_ref[...], preferred_element_type=jnp.float32)
          + jnp.dot(scn_ref[...], w1b_ref[...], preferred_element_type=jnp.float32)
          + b1_ref[...])
    h1 = jnp.maximum(h1, 0.0).astype(w2_ref.dtype)

    # Layer 2: Linear(512, 128) with BN1 folded in, then ReLU.  BN2 folded into W3/b3.
    h2 = jnp.dot(h1, w2_ref[...], preferred_element_type=jnp.float32) + b2_ref[...]
    h2 = jnp.maximum(h2, 0.0).astype(w3_ref.dtype)

    # Layer 3: Linear(128, 1) zero-padded to 128 lanes -> lane-dense store.
    logits = jnp.dot(h2, w3_ref[...], preferred_element_type=jnp.float32) + b3_ref[...]
    o_ref[...] = jax.nn.sigmoid(logits)


@functools.partial(jax.jit, static_argnames=("block_b",))
def scene_comparison_mlp(obj_fusion, scene_embedding, params, *, block_b=256):
    """Forward pass.  obj_fusion, scene_embedding: (B, 512) float32 each."""
    B, D = obj_fusion.shape
    assert scene_embedding.shape == (B, D) and 2 * D == INPUT_DIM

    # ---- fold eval-mode BatchNorm (running stats + affine) into next Linear ----
    def fold_bn(gamma, beta, mean, var):
        scale = gamma / jnp.sqrt(var + BN_EPS)
        shift = beta - mean * scale
        return scale, shift

    s1, t1 = fold_bn(params["bn1_gamma"], params["bn1_beta"],
                     params["bn1_mean"], params["bn1_var"])
    s2, t2 = fold_bn(params["bn2_gamma"], params["bn2_beta"],
                     params["bn2_mean"], params["bn2_var"])

    mm_dtype = jnp.bfloat16   # MXU-native; accumulate in f32, epilogue in f32

    w1 = params["w1"]                                  # (1024, 512), in-major layout
    w1a = w1[:D].astype(mm_dtype)                      # (512, 512) for obj_fusion
    w1b = w1[D:].astype(mm_dtype)                      # (512, 512) for scene_embedding
    b1 = params["b1"][None, :].astype(jnp.float32)     # (1, 512)

    # BN1 folded:  (h*s1 + t1) @ W2 + b2 == h @ (s1[:,None]*W2) + (t1 @ W2 + b2)
    w2 = (s1[:, None] * params["w2"]).astype(mm_dtype)                   # (512, 128)
    b2 = (params["b2"] + t1 @ params["w2"])[None, :].astype(jnp.float32) # (1, 128)

    # BN2 folded into layer 3, then zero-pad the single output column to 128 lanes.
    w3f = s2[:, None] * params["w3"]                   # (128, 1)
    b3f = params["b3"] + t2 @ params["w3"]             # (1,)
    w3 = jnp.zeros((H2, OUT_PAD), jnp.float32).at[:, 0].set(w3f[:, 0]).astype(mm_dtype)
    b3 = jnp.zeros((1, OUT_PAD), jnp.float32).at[0, 0].set(b3f[0])

    # ---- batch tiling: pad B up to a multiple of the batch tile ----
    TB = min(block_b, _round_up(B, 8))
    Bp = _round_up(B, TB)
    pad = Bp - B
    obj = obj_fusion.astype(mm_dtype)
    scn = scene_embedding.astype(mm_dtype)
    if pad:
        obj = jnp.pad(obj, ((0, pad), (0, 0)))
        scn = jnp.pad(scn, ((0, pad), (0, 0)))

    grid = (Bp // TB,)

    def batch_spec(cols):
        return pl.BlockSpec((TB, cols), lambda i: (i, 0))

    def const_spec(shape):
        return pl.BlockSpec(shape, lambda i: (0, 0))   # VMEM-resident across steps

    in_specs = [
        batch_spec(D), batch_spec(D),
        const_spec((D, H1)), const_spec((D, H1)), const_spec((1, H1)),
        const_spec((H1, H2)), const_spec((1, H2)),
        const_spec((H2, OUT_PAD)), const_spec((1, OUT_PAD)),
    ]
    out_spec = pl.BlockSpec((TB, OUT_PAD), lambda i: (i, 0))

    flops = 2 * Bp * (INPUT_DIM * H1 + H1 * H2 + H2 * OUT_PAD)
    bytes_accessed = (
        (obj.size + scn.size) * 2                              # bf16 activations
        + (w1a.size + w1b.size + w2.size + w3.size) * 2        # bf16 weights
        + (b1.size + b2.size + b3.size) * 4                    # f32 biases
        + Bp * OUT_PAD * 4                                     # f32 output
    )
    cost = pl.CostEstimate(flops=flops,
                           transcendentals=Bp * OUT_PAD,
                           bytes_accessed=bytes_accessed)

    out = pl.pallas_call(
        _mlp_kernel,
        out_shape=jax.ShapeDtypeStruct((Bp, OUT_PAD), jnp.float32),
        grid=grid,
        in_specs=in_specs,
        out_specs=out_spec,
        compiler_params=pltpu.CompilerParams(
            dimension_semantics=("parallel",),   # shard batch tiles across v7x's 2 TCs
            vmem_limit_bytes=32 << 20,
        ),
        cost_estimate=cost,
    )(obj, scn, w1a, w1b, b1, w2, b2, w3, b3)

    return out[:B, :1]


def init_params(key):
    ks = jax.random.split(key, 6)
    return {
        # Linear weights stored as (in, out); biases (out,)
        "w1": jax.random.normal(ks[0], (INPUT_DIM, H1), jnp.float32) * 0.02,
        "b1": jax.random.normal(ks[1], (H1,), jnp.float32) * 0.01,
        "w2": jax.random.normal(ks[2], (H1, H2), jnp.float32) * 0.02,
        "b2": jax.random.normal(ks[3], (H2,), jnp.float32) * 0.01,
        "w3": jax.random.normal(ks[4], (H2, 1), jnp.float32) * 0.02,
        "b3": jax.random.normal(ks[5], (1,), jnp.float32) * 0.01,
        # BatchNorm1d params / running stats (PyTorch defaults)
        "bn1_gamma": jnp.ones((H1,), jnp.float32),
        "bn1_beta": jnp.zeros((H1,), jnp.float32),
        "bn1_mean": jnp.zeros((H1,), jnp.float32),
        "bn1_var": jnp.ones((H1,), jnp.float32),
        "bn2_gamma": jnp.ones((H2,), jnp.float32),
        "bn2_beta": jnp.zeros((H2,), jnp.float32),
        "bn2_mean": jnp.zeros((H2,), jnp.float32),
        "bn2_var": jnp.ones((H2,), jnp.float32),
    }


def _reference(obj_fusion, scene_embedding, params):
    """Pure-JAX f32 reference for correctness check."""
    x = jnp.concatenate([obj_fusion, scene_embedding], axis=1)
    h = jnp.maximum(x @ params["w1"] + params["b1"], 0.0)
    h = (h - params["bn1_mean"]) / jnp.sqrt(params["bn1_var"] + BN_EPS) \
        * params["bn1_gamma"] + params["bn1_beta"]
    h = jnp.maximum(h @ params["w2"] + params["b2"], 0.0)
    h = (h - params["bn2_mean"]) / jnp.sqrt(params["bn2_var"] + BN_EPS) \
        * params["bn2_gamma"] + params["bn2_beta"]
    return jax.nn.sigmoid(h @ params["w3"] + params["b3"])


if __name__ == "__main__":
    key = jax.random.PRNGKey(0)
    k_obj, k_scene, k_params = jax.random.split(key, 3)
    params = init_params(k_params)

    # Small shape (single grid step) and a larger one that exercises batch
    # tiling + padding (TB=256, grid=2).
    for B in (8, 300):
        ko, ks = jax.random.split(jax.random.fold_in(k_obj, B))
        obj_fusion = jax.random.normal(ko, (B, INPUT_DIM // 2), jnp.float32)
        scene_embedding = jax.random.normal(ks, (B, INPUT_DIM // 2), jnp.float32)

        out = scene_comparison_mlp(obj_fusion, scene_embedding, params)
        out = jax.block_until_ready(out)

        ref = _reference(obj_fusion, scene_embedding, params)
        assert out.shape == (B, 1), out.shape
        max_err = float(jnp.max(jnp.abs(out - ref)))
        # bf16 matmul operands -> loosened tolerance vs. the f32 reference.
        assert max_err < 2e-2, f"B={B}: max err {max_err}"

    print("KERNEL_OK")
</pallas_src>

<mosaic_0001>
module attributes {stable_mosaic.version = 11 : i64} {
  func.func @_mlp_kernel(%arg0: i32, %arg1: memref<8x512xbf16, #tpu.memory_space<vmem>>, %arg2: memref<8x512xbf16, #tpu.memory_space<vmem>>, %arg3: memref<512x512xbf16, #tpu.memory_space<vmem>>, %arg4: memref<512x512xbf16, #tpu.memory_space<vmem>>, %arg5: memref<1x512xf32, #tpu.memory_space<vmem>>, %arg6: memref<512x128xbf16, #tpu.memory_space<vmem>>, %arg7: memref<1x128xf32, #tpu.memory_space<vmem>>, %arg8: memref<128x128xbf16, #tpu.memory_space<vmem>>, %arg9: memref<1x128xf32, #tpu.memory_space<vmem>>, %arg10: memref<8x128xf32, #tpu.memory_space<vmem>>) attributes {dimension_semantics = [#tpu.dimension_semantics<parallel>], iteration_bounds = array<i64: 1>, scalar_prefetch = 0 : i64, scratch_operands = 0 : i64, tpu.core_type = #tpu.core_type<tc>, window_params = [{transform_indices = @transform_0, window_bounds = array<i64: 8, 512>}, {transform_indices = @transform_1, window_bounds = array<i64: 8, 512>}, {pipeline_mode = #tpu.pipeline_mode<synchronous>, transform_indices = @transform_2, window_bounds = array<i64: 512, 512>}, {pipeline_mode = #tpu.pipeline_mode<synchronous>, transform_indices = @transform_3, window_bounds = array<i64: 512, 512>}, {pipeline_mode = #tpu.pipeline_mode<synchronous>, transform_indices = @transform_4, window_bounds = array<i64: 1, 512>}, {pipeline_mode = #tpu.pipeline_mode<synchronous>, transform_indices = @transform_5, window_bounds = array<i64: 512, 128>}, {pipeline_mode = #tpu.pipeline_mode<synchronous>, transform_indices = @transform_6, window_bounds = array<i64: 1, 128>}, {pipeline_mode = #tpu.pipeline_mode<synchronous>, transform_indices = @transform_7, window_bounds = array<i64: 128, 128>}, {pipeline_mode = #tpu.pipeline_mode<synchronous>, transform_indices = @transform_8, window_bounds = array<i64: 1, 128>}, {transform_indices = @transform_9, window_bounds = array<i64: 8, 128>}]} {
    %c0 = arith.constant 0 : index
    %c0_0 = arith.constant 0 : index
    %0 = vector.load %arg1[%c0, %c0_0] : memref<8x512xbf16, #tpu.memory_space<vmem>>, vector<8x512xbf16>
    %c0_1 = arith.constant 0 : index
    %c0_2 = arith.constant 0 : index
    %1 = vector.load %arg3[%c0_1, %c0_2] : memref<512x512xbf16, #tpu.memory_space<vmem>>, vector<512x512xbf16>
    %cst = arith.constant dense<0.000000e+00> : vector<8x512xf32>
    %2 = tpu.matmul %0, %1, %cst {dimension_numbers = #tpu.dot_dimension_numbers<[1], [0], [0], [1], [0, 0, 1, 1], [], []>} : vector<8x512xbf16>, vector<512x512xbf16>, vector<8x512xf32> -> vector<8x512xf32>
    %c0_3 = arith.constant 0 : index
    %c0_4 = arith.constant 0 : index
    %3 = vector.load %arg2[%c0_3, %c0_4] : memref<8x512xbf16, #tpu.memory_space<vmem>>, vector<8x512xbf16>
    %c0_5 = arith.constant 0 : index
    %c0_6 = arith.constant 0 : index
    %4 = vector.load %arg4[%c0_5, %c0_6] : memref<512x512xbf16, #tpu.memory_space<vmem>>, vector<512x512xbf16>
    %cst_7 = arith.constant dense<0.000000e+00> : vector<8x512xf32>
    %5 = tpu.matmul %3, %4, %cst_7 {dimension_numbers = #tpu.dot_dimension_numbers<[1], [0], [0], [1], [0, 0, 1, 1], [], []>} : vector<8x512xbf16>, vector<512x512xbf16>, vector<8x512xf32> -> vector<8x512xf32>
    %6 = arith.addf %2, %5 : vector<8x512xf32>
    %c0_8 = arith.constant 0 : index
    %c0_9 = arith.constant 0 : index
    %7 = vector.load %arg5[%c0_8, %c0_9] : memref<1x512xf32, #tpu.memory_space<vmem>>, vector<1x512xf32>
    %8 = vector.broadcast %7 : vector<1x512xf32> to vector<8x512xf32>
    %9 = arith.addf %6, %8 : vector<8x512xf32>
    %cst_10 = arith.constant 0.000000e+00 : f32
    %10 = vector.broadcast %cst_10 : f32 to vector<8x512xf32>
    %11 = arith.maximumf %9, %10 : vector<8x512xf32>
    %12 = arith.truncf %11 : vector<8x512xf32> to vector<8x512xbf16>
    %c0_11 = arith.constant 0 : index
    %c0_12 = arith.constant 0 : index
    %13 = vector.load %arg6[%c0_11, %c0_12] : memref<512x128xbf16, #tpu.memory_space<vmem>>, vector<512x128xbf16>
    %cst_13 = arith.constant dense<0.000000e+00> : vector<8x128xf32>
    %14 = tpu.matmul %12, %13, %cst_13 {dimension_numbers = #tpu.dot_dimension_numbers<[1], [0], [0], [1], [0, 0, 1, 1], [], []>} : vector<8x512xbf16>, vector<512x128xbf16>, vector<8x128xf32> -> vector<8x128xf32>
    %c0_14 = arith.constant 0 : index
    %c0_15 = arith.constant 0 : index
    %15 = vector.load %arg7[%c0_14, %c0_15] : memref<1x128xf32, #tpu.memory_space<vmem>>, vector<1x128xf32>
    %16 = vector.broadcast %15 : vector<1x128xf32> to vector<8x128xf32>
    %17 = arith.addf %14, %16 : vector<8x128xf32>
    %cst_16 = arith.constant 0.000000e+00 : f32
    %18 = vector.broadcast %cst_16 : f32 to vector<8x128xf32>
    %19 = arith.maximumf %17, %18 : vector<8x128xf32>
    %20 = arith.truncf %19 : vector<8x128xf32> to vector<8x128xbf16>
    %c0_17 = arith.constant 0 : index
    %c0_18 = arith.constant 0 : index
    %21 = vector.load %arg8[%c0_17, %c0_18] : memref<128x128xbf16, #tpu.memory_space<vmem>>, vector<128x128xbf16>
    %cst_19 = arith.constant dense<0.000000e+00> : vector<8x128xf32>
    %22 = tpu.matmul %20, %21, %cst_19 {dimension_numbers = #tpu.dot_dimension_numbers<[1], [0], [0], [1], [0, 0, 1, 1], [], []>} : vector<8x128xbf16>, vector<128x128xbf16>, vector<8x128xf32> -> vector<8x128xf32>
    %c0_20 = arith.constant 0 : index
    %c0_21 = arith.constant 0 : index
    %23 = vector.load %arg9[%c0_20, %c0_21] : memref<1x128xf32, #tpu.memory_space<vmem>>, vector<1x128xf32>
    %24 = vector.broadcast %23 : vector<1x128xf32> to vector<8x128xf32>
    %25 = arith.addf %22, %24 : vector<8x128xf32>
    %26 = arith.negf %25 : vector<8x128xf32>
    %27 = math.exp %26 : vector<8x128xf32>
    %cst_22 = arith.constant 1.000000e+00 : f32
    %28 = vector.broadcast %cst_22 : f32 to vector<8x128xf32>
    %29 = arith.addf %28, %27 : vector<8x128xf32>
    %30 = arith.divf %28, %29 : vector<8x128xf32>
    %c0_23 = arith.constant 0 : index
    %c0_24 = arith.constant 0 : index
    %31 = vector.load %arg10[%c0_23, %c0_24] : memref<8x128xf32, #tpu.memory_space<vmem>>, vector<8x128xf32>
    tpu.vector_store %arg10[%c0_23, %c0_24], %30 {strides = array<i32>} : memref<8x128xf32, #tpu.memory_space<vmem>>, vector<8x128xf32>,
    return
  }
  func.func @transform_0(%arg0: i32) -> (i32, i32) {
    %c0_i32 = arith.constant 0 : i32
    %c0_i32_0 = arith.constant 0 : i32
    return %arg0, %c0_i32 : i32, i32
  }
  func.func @transform_1(%arg0: i32) -> (i32, i32) {
    %c0_i32 = arith.constant 0 : i32
    %c0_i32_0 = arith.constant 0 : i32
    return %arg0, %c0_i32 : i32, i32
  }
  func.func @transform_2(%arg0: i32) -> (i32, i32) {
    %c0_i32 = arith.constant 0 : i32
    %c0_i32_0 = arith.constant 0 : i32
    %c0_i32_1 = arith.constant 0 : i32
    return %c0_i32, %c0_i32_0 : i32, i32
  }
  func.func @transform_3(%arg0: i32) -> (i32, i32) {
    %c0_i32 = arith.constant 0 : i32
    %c0_i32_0 = arith.constant 0 : i32
    %c0_i32_1 = arith.constant 0 : i32
    return %c0_i32, %c0_i32_0 : i32, i32
  }
  func.func @transform_4(%arg0: i32) -> (i32, i32) {
    %c0_i32 = arith.constant 0 : i32
    %c0_i32_0 = arith.constant 0 : i32
    %c0_i32_1 = arith.constant 0 : i32
    return %c0_i32, %c0_i32_0 : i32, i32
  }
  func.func @transform_5(%arg0: i32) -> (i32, i32) {
    %c0_i32 = arith.constant 0 : i32
    %c0_i32_0 = arith.constant 0 : i32
    %c0_i32_1 = arith.constant 0 : i32
    return %c0_i32, %c0_i32_0 : i32, i32
  }
  func.func @transform_6(%arg0: i32) -> (i32, i32) {
    %c0_i32 = arith.constant 0 : i32
    %c0_i32_0 = arith.constant 0 : i32
    %c0_i32_1 = arith.constant 0 : i32
    return %c0_i32, %c0_i32_0 : i32, i32
  }
  func.func @transform_7(%arg0: i32) -> (i32, i32) {
    %c0_i32 = arith.constant 0 : i32
    %c0_i32_0 = arith.constant 0 : i32
    %c0_i32_1 = arith.constant 0 : i32
    return %c0_i32, %c0_i32_0 : i32, i32
  }
  func.func @transform_8(%arg0: i32) -> (i32, i32) {
    %c0_i32 = arith.constant 0 : i32
    %c0_i32_0 = arith.constant 0 : i32
    %c0_i32_1 = arith.constant 0 : i32
    return %c0_i32, %c0_i32_0 : i32, i32
  }
  func.func @transform_9(%arg0: i32) -> (i32, i32) {
    %c0_i32 = arith.constant 0 : i32
    %c0_i32_0 = arith.constant 0 : i32
    return %arg0, %c0_i32 : i32, i32
  }
}

</mosaic_0001>

<bundles_post_ra>
// kernel: scene_comparison_mlp.1
= control target key start
LH: loop header
LB: loop body
LE: loop exit
PB: predicated region body
PF: predicated region fallthrough
CT: control target
= control target key end

     0   :  { %s5740_s3 = inlined_call_operand.vmem [shape: bf16[512,512], index: 3, kind: input, shape index: {}]   ;;  %s5741_s1 = inlined_call_operand.vmem [shape: bf16[8,512], index: 1, kind: input, shape index: {}]   ;;  %s5742_s2 = inlined_call_operand.vmem [shape: bf16[512,512], index: 2, kind: input, shape index: {}]   ;;  %s5743_s0 = inlined_call_operand.vmem [shape: bf16[8,512], index: 0, kind: input, shape index: {}]   ;;  %s5744_s5 = inlined_call_operand.vmem [shape: bf16[512,128], index: 5, kind: input, shape index: {}]   ;;  %s5745_s6 = inlined_call_operand.vmem [shape: f32[1,128], index: 6, kind: input, shape index: {}]   ;;  %s5746_s4 = inlined_call_operand.vmem [shape: f32[1,512], index: 4, kind: input, shape index: {}]   ;;  %s5747_s8 = inlined_call_operand.vmem [shape: f32[1,128], index: 8, kind: input, shape index: {}]   ;;  %s5748_s7 = inlined_call_operand.vmem [shape: bf16[128,128], index: 7, kind: input, shape index: {}]   ;;  %s5749_s9 = inlined_call_operand.vmem [shape: f32[8,128], index: 9, kind: output, shape index: {}]  }
   0x1   :  { %v2571_v0 = vld [vmem:[%s5740_s3 + $0xe0] sm:$0xf]  ;;  %v3800_v1 = vld [vmem:[%s5740_s3 + $0xec] sm:$0xf0] }
   0x2   :  { %v2699_v2 = vld [vmem:[%s5740_s3 + $0x1e0] sm:$0xf]  ;;  %v2572_v3 = vor.u32 %v3800_v1, %v2571_v0  ;;  %v3832_v4 = vld [vmem:[%s5740_s3 + $0x1ec] sm:$0xf0] }
   0x3   :  { %v2827_v5 = vld [vmem:[%s5740_s3 + $0x2e0] sm:$0xf]  ;;  %v3864_v6 = vld [vmem:[%s5740_s3 + $0x2ec] sm:$0xf0]  ;;  %v2700_v7 = vor.u32 %v3832_v4, %v2699_v2 }
   0x4   :  { %v2828_v8 = vor.u32 %v3864_v6, %v2827_v5  ;;  %v2955_v9 = vld [vmem:[%s5740_s3 + $0x3e0] sm:$0xf]  ;;  %v3896_v10 = vld [vmem:[%s5740_s3 + $0x3ec] sm:$0xf0]  ;;  %946 = vmatpush.bf16.msra.mxu0 %v2572_v3 }
   0x5   :  { %v2555_v11 = vld [vmem:[%s5740_s3 + $0xc0] sm:$0xf]  ;;  %v2956_v12 = vor.u32 %v3896_v10, %v2955_v9  ;;  %v3796_v13 = vld [vmem:[%s5740_s3 + $0xcc] sm:$0xf0]  ;;  %959 = vmatpush.bf16.msra.mxu1 %v2700_v7 }
   0x6   :  { %v2683_v14 = vld [vmem:[%s5740_s3 + $0x1c0] sm:$0xf]  ;;  %v3828_v15 = vld [vmem:[%s5740_s3 + $0x1cc] sm:$0xf0]  ;;  %972 = vmatpush.bf16.msra.mxu2 %v2828_v8  ;;  %v2556_v16 = vor.u32 %v3796_v13, %v2555_v11 }
   0x7   :  { %v2684_v17 = vor.u32 %v3828_v15, %v2683_v14  ;;  %v2811_v18 = vld [vmem:[%s5740_s3 + $0x2c0] sm:$0xf]  ;;  %v3860_v19 = vld [vmem:[%s5740_s3 + $0x2cc] sm:$0xf0]  ;;  %985 = vmatpush.bf16.msra.mxu3 %v2956_v12 }
   0x8   :  { %v2939_v20 = vld [vmem:[%s5740_s3 + $0x3c0] sm:$0xf]  ;;  %v2812_v21 = vor.u32 %v3860_v19, %v2811_v18  ;;  %v3892_v22 = vld [vmem:[%s5740_s3 + $0x3cc] sm:$0xf0]  ;;  %947 = vmatpush.bf16.msra.mxu0 %v2556_v16 }
   0x9   :  { %v2539_v23 = vld [vmem:[%s5740_s3 + $0xa0] sm:$0xf]  ;;  %v3792_v24 = vld [vmem:[%s5740_s3 + $0xac] sm:$0xf0]  ;;  %v2940_v25 = vor.u32 %v3892_v22, %v2939_v20  ;;  %960 = vmatpush.bf16.msra.mxu1 %v2684_v17 }
   0xa   :  { %v2667_v26 = vld [vmem:[%s5740_s3 + $0x1a0] sm:$0xf]  ;;  %v3824_v27 = vld [vmem:[%s5740_s3 + $0x1ac] sm:$0xf0]  ;;  %v2540_v29 = vor.u32 %v3792_v24, %v2539_v23  ;;  %973 = vmatpush.bf16.msra.mxu2 %v2812_v21 }
   0xb   :  { %v2795_v28 = vld [vmem:[%s5740_s3 + $0x2a0] sm:$0xf]  ;;  %v3856_v30 = vld [vmem:[%s5740_s3 + $0x2ac] sm:$0xf0]  ;;  %v2668_v33 = vor.u32 %v3824_v27, %v2667_v26  ;;  %986 = vmatpush.bf16.msra.mxu3 %v2940_v25 }
   0xc   :  { %v2923_v31 = vld [vmem:[%s5740_s3 + $0x3a0] sm:$0xf]  ;;  %v3888_v32 = vld [vmem:[%s5740_s3 + $0x3ac] sm:$0xf0]  ;;  %v2796_v34 = vor.u32 %v3856_v30, %v2795_v28  ;;  %948 = vmatpush.bf16.msra.mxu0 %v2540_v29  ;;  %v3798_v28 = vld [vmem:[%s5740_s3 + $0xe4] sm:$0xf] }
   0xd   :  { %v2523_v35 = vld [vmem:[%s5740_s3 + $0x80] sm:$0xf]  ;;  %v3788_v36 = vld [vmem:[%s5740_s3 + $0x8c] sm:$0xf0]  ;;  %v2924_v38 = vor.u32 %v3888_v32, %v2923_v31  ;;  %961 = vmatpush.bf16.msra.mxu1 %v2668_v33  ;;  %v2573_v29 = vld [vmem:[%s5740_s3 + $0xf0] sm:$0xf0] }
   0xe   :  { %v2651_v37 = vld [vmem:[%s5740_s3 + $0x180] sm:$0xf]  ;;  %v3820_v39 = vld [vmem:[%s5740_s3 + $0x18c] sm:$0xf0]  ;;  %v2524_v44 = vor.u32 %v3788_v36, %v2523_v35  ;;  %974 = vmatpush.bf16.msra.mxu2 %v2796_v34  ;;  %v3830_v30 = vld [vmem:[%s5740_s3 + $0x1e4] sm:$0xf] }
   0xf   :  { %v2779_v40 = vld [vmem:[%s5740_s3 + $0x280] sm:$0xf]  ;;  %v3852_v41 = vld [vmem:[%s5740_s3 + $0x28c] sm:$0xf0]  ;;  %v2652_v45 = vor.u32 %v3820_v39, %v2651_v37  ;;  %987 = vmatpush.bf16.msra.mxu3 %v2924_v38  ;;  %v2701_v32 = vld [vmem:[%s5740_s3 + $0x1f0] sm:$0xf0] }
  0x10   :  { %v2907_v42 = vld [vmem:[%s5740_s3 + $0x380] sm:$0xf]  ;;  %v3884_v43 = vld [vmem:[%s5740_s3 + $0x38c] sm:$0xf0]  ;;  %v2780_v46 = vor.u32 %v3852_v41, %v2779_v40  ;;  %949 = vmatpush.bf16.msra.mxu0 %v2524_v44  ;;  %v3862_v33 = vld [vmem:[%s5740_s3 + $0x2e4] sm:$0xf]  ;;  %v2576_v40 = vor.u32 %v3798_v28, %v2573_v29  ;;  %v2704_v41 = vor.u32 %v3830_v30, %v2701_v32 }
  0x11   :  { %v2507_v47 = vld [vmem:[%s5740_s3 + $0x60] sm:$0xf]  ;;  %v3784_v48 = vld [vmem:[%s5740_s3 + $0x6c] sm:$0xf0]  ;;  %v2908_v50 = vor.u32 %v3884_v43, %v2907_v42  ;;  %962 = vmatpush.bf16.msra.mxu1 %v2652_v45  ;;  %v2829_v34 = vld [vmem:[%s5740_s3 + $0x2f0] sm:$0xf0] }
  0x12   :  { %v2635_v49 = vld [vmem:[%s5740_s3 + $0x160] sm:$0xf]  ;;  %v3816_v51 = vld [vmem:[%s5740_s3 + $0x16c] sm:$0xf0]  ;;  %v2508_v56 = vor.u32 %v3784_v48, %v2507_v47  ;;  %975 = vmatpush.bf16.msra.mxu2 %v2780_v46  ;;  %v3894_v37 = vld [vmem:[%s5740_s3 + $0x3e4] sm:$0xf]  ;;  %v2832_v42 = vor.u32 %v3862_v33, %v2829_v34 }
  0x13   :  { %v2763_v52 = vld [vmem:[%s5740_s3 + $0x260] sm:$0xf]  ;;  %v3848_v53 = vld [vmem:[%s5740_s3 + $0x26c] sm:$0xf0]  ;;  %v2636_v57 = vor.u32 %v3816_v51, %v2635_v49  ;;  %988 = vmatpush.bf16.msra.mxu3 %v2908_v50  ;;  %v2957_v38 = vld [vmem:[%s5740_s3 + $0x3f0] sm:$0xf0] }
  0x14   :  { %v2891_v54 = vld [vmem:[%s5740_s3 + $0x360] sm:$0xf]  ;;  %v3880_v55 = vld [vmem:[%s5740_s3 + $0x36c] sm:$0xf0]  ;;  %v2764_v58 = vor.u32 %v3848_v53, %v2763_v52  ;;  %950 = vmatpush.bf16.msra.mxu0 %v2508_v56  ;;  %v3794_v43 = vld [vmem:[%s5740_s3 + $0xc4] sm:$0xf]  ;;  %v2960_v46 = vor.u32 %v3894_v37, %v2957_v38 }
  0x15   :  { %v2491_v59 = vld [vmem:[%s5740_s3 + $0x40] sm:$0xf]  ;;  %v3780_v60 = vld [vmem:[%s5740_s3 + $0x4c] sm:$0xf0]  ;;  %v2892_v62 = vor.u32 %v3880_v55, %v2891_v54  ;;  %963 = vmatpush.bf16.msra.mxu1 %v2636_v57  ;;  %v2557_v44 = vld [vmem:[%s5740_s3 + $0xd0] sm:$0xf0] }
  0x16   :  { %v2619_v61 = vld [vmem:[%s5740_s3 + $0x140] sm:$0xf]  ;;  %v3812_v63 = vld [vmem:[%s5740_s3 + $0x14c] sm:$0xf0]  ;;  %v2492_v4 = vor.u32 %v3780_v60, %v2491_v59  ;;  %976 = vmatpush.bf16.msra.mxu2 %v2764_v58  ;;  %v3826_v45 = vld [vmem:[%s5740_s3 + $0x1c4] sm:$0xf]  ;;  %v2560_v52 = vor.u32 %v3794_v43, %v2557_v44 }
  0x17   :  { %v2747_v0 = vld [vmem:[%s5740_s3 + $0x240] sm:$0xf]  ;;  %v3844_v1 = vld [vmem:[%s5740_s3 + $0x24c] sm:$0xf0]  ;;  %v2620_v5 = vor.u32 %v3812_v63, %v2619_v61  ;;  %989 = vmatpush.bf16.msra.mxu3 %v2892_v62  ;;  %v2685_v47 = vld [vmem:[%s5740_s3 + $0x1d0] sm:$0xf0] }
  0x18   :  { %v2875_v2 = vld [vmem:[%s5740_s3 + $0x340] sm:$0xf]  ;;  %v3876_v3 = vld [vmem:[%s5740_s3 + $0x34c] sm:$0xf0]  ;;  %v2748_v6 = vor.u32 %v3844_v1, %v2747_v0  ;;  %951 = vmatpush.bf16.msra.mxu0 %v2492_v4  ;;  %v3858_v48 = vld [vmem:[%s5740_s3 + $0x2c4] sm:$0xf]  ;;  %v2688_v54 = vor.u32 %v3826_v45, %v2685_v47 }
  0x19   :  { %v2475_v7 = vld [vmem:[%s5740_s3 + $0x20] sm:$0xf]  ;;  %v3776_v8 = vld [vmem:[%s5740_s3 + $0x2c] sm:$0xf0]  ;;  %v2876_v10 = vor.u32 %v3876_v3, %v2875_v2  ;;  %964 = vmatpush.bf16.msra.mxu1 %v2620_v5  ;;  %v2813_v49 = vld [vmem:[%s5740_s3 + $0x2d0] sm:$0xf0] }
  0x1a   :  { %v2603_v9 = vld [vmem:[%s5740_s3 + $0x120] sm:$0xf]  ;;  %v3808_v11 = vld [vmem:[%s5740_s3 + $0x12c] sm:$0xf0]  ;;  %v2476_v16 = vor.u32 %v3776_v8, %v2475_v7  ;;  %977 = vmatpush.bf16.msra.mxu2 %v2748_v6  ;;  %v3890_v50 = vld [vmem:[%s5740_s3 + $0x3c4] sm:$0xf]  ;;  %v2816_v55 = vor.u32 %v3858_v48, %v2813_v49 }
  0x1b   :  { %v2731_v12 = vld [vmem:[%s5740_s3 + $0x220] sm:$0xf]  ;;  %v3840_v13 = vld [vmem:[%s5740_s3 + $0x22c] sm:$0xf0]  ;;  %v2604_v19 = vor.u32 %v3808_v11, %v2603_v9  ;;  %990 = vmatpush.bf16.msra.mxu3 %v2876_v10  ;;  %v2941_v51 = vld [vmem:[%s5740_s3 + $0x3d0] sm:$0xf0] }
  0x1c   :  { %v2859_v14 = vld [vmem:[%s5740_s3 + $0x320] sm:$0xf]  ;;  %v3872_v15 = vld [vmem:[%s5740_s3 + $0x32c] sm:$0xf0]  ;;  %v2732_v20 = vor.u32 %v3840_v13, %v2731_v12  ;;  %952 = vmatpush.bf16.msra.mxu0 %v2476_v16  ;;  %v3790_v53 = vld [vmem:[%s5740_s3 + $0xa4] sm:$0xf]  ;;  %v2944_v59 = vor.u32 %v3890_v50, %v2941_v51 }
  0x1d   :  { %v2459_v17 = vld [vmem:[%s5740_s3] sm:$0xf]  ;;  %v3772_v18 = vld [vmem:[%s5740_s3 + $0xc] sm:$0xf0]  ;;  %v2860_v24 = vor.u32 %v3872_v15, %v2859_v14  ;;  %965 = vmatpush.bf16.msra.mxu1 %v2604_v19  ;;  %v2541_v56 = vld [vmem:[%s5740_s3 + $0xb0] sm:$0xf0] }
  0x1e   :  { %v2587_v21 = vld [vmem:[%s5740_s3 + $0x100] sm:$0xf]  ;;  %v3804_v22 = vld [vmem:[%s5740_s3 + $0x10c] sm:$0xf0]  ;;  %v2460_v31 = vor.u32 %v3772_v18, %v2459_v17  ;;  %978 = vmatpush.bf16.msra.mxu2 %v2732_v20  ;;  %v3822_v57 = vld [vmem:[%s5740_s3 + $0x1a4] sm:$0xf]  ;;  %v2544_v0 = vor.u32 %v3790_v53, %v2541_v56 }
  0x1f   :  { %v2715_v23 = vld [vmem:[%s5740_s3 + $0x200] sm:$0xf]  ;;  %v3836_v25 = vld [vmem:[%s5740_s3 + $0x20c] sm:$0xf0]  ;;  %v2588_v35 = vor.u32 %v3804_v22, %v2587_v21  ;;  %991 = vmatpush.bf16.msra.mxu3 %v2860_v24  ;;  %v2669_v58 = vld [vmem:[%s5740_s3 + $0x1b0] sm:$0xf0] }
  0x20   :  { %v2843_v26 = vld [vmem:[%s5740_s3 + $0x300] sm:$0xf]  ;;  %v3868_v27 = vld [vmem:[%s5740_s3 + $0x30c] sm:$0xf0]  ;;  %v2716_v36 = vor.u32 %v3836_v25, %v2715_v23  ;;  %953 = vmatpush.bf16.msra.mxu0 %v2460_v31  ;;  %v3854_v60 = vld [vmem:[%s5740_s3 + $0x2a4] sm:$0xf]  ;;  %v2672_v1 = vor.u32 %v3822_v57, %v2669_v58 }
  0x21   :  { %v2844_v39 = vor.u32 %v3868_v27, %v2843_v26  ;;  %966 = vmatpush.bf16.msra.mxu1 %v2588_v35  ;;  %v2797_v61 = vld [vmem:[%s5740_s3 + $0x2b0] sm:$0xf0]  ;;  %v3886_v62 = vld [vmem:[%s5740_s3 + $0x3a4] sm:$0xf]  ;;  %v163_v2 = vld [vmem:[%s5741_s1 + $0x8] sm:$0xff] }
  0x22   :  { %979 = vmatpush.bf16.msra.mxu2 %v2716_v36  ;;  %v2925_v63 = vld [vmem:[%s5740_s3 + $0x3b0] sm:$0xf0]  ;;  %v162_v3 = vld [vmem:[%s5741_s1] sm:$0xff]  ;;  %v2800_v4 = vor.u32 %v3854_v60, %v2797_v61  ;;  %v296_v8 = vunpack.c.l.b16 %v163_v2  ;;  %v297_v10 = vunpack.c.h.b16 %v163_v2 }
  0x23   :  { %992 = vmatpush.bf16.msra.mxu3 %v2844_v39  ;;  %v3786_v5 = vld [vmem:[%s5740_s3 + $0x84] sm:$0xf]  ;;  %v2525_v6 = vld [vmem:[%s5740_s3 + $0x90] sm:$0xf0]  ;;  %v294_v9 = vunpack.c.l.b16 %v162_v3  ;;  %v2928_v11 = vor.u32 %v3886_v62, %v2925_v63  ;;  %v295_v15 = vunpack.c.h.b16 %v162_v3 }
  0x24   :  { %998 = vmatpush.bf16.msrb.mxu0 %v2576_v40  ;;  %v3818_v7 = vld [vmem:[%s5740_s3 + $0x184] sm:$0xf]  ;;  %v2653_v12 = vld [vmem:[%s5740_s3 + $0x190] sm:$0xf0]  ;;  %v4288_v18 = vpack.c.b16 %v296_v8, %v296_v8  ;;  %v4292_v20 = vpack.c.b16 %v297_v10, %v297_v10  ;;  %v2528_v21 = vor.u32 %v3786_v5, %v2525_v6  ;;  %v2579_v6 = vld [vmem:[%s5740_s3 + $0xe8] sm:$0xf] }
  0x25   :  { %1011 = vmatpush.bf16.msrb.mxu1 %v2704_v41  ;;  %v3850_v13 = vld [vmem:[%s5740_s3 + $0x284] sm:$0xf]  ;;  %v2781_v14 = vld [vmem:[%s5740_s3 + $0x290] sm:$0xf0]  ;;  %v4290_v19 = vpack.c.b16 %v294_v9, %v294_v9  ;;  %v4294_v22 = vpack.c.b16 %v295_v15, %v295_v15  ;;  %v2656_v23 = vor.u32 %v3818_v7, %v2653_v12  ;;  %v3801_v7 = vld [vmem:[%s5740_s3 + $0xf4] sm:$0xf0] }
  0x26   :  { %1024 = vmatpush.bf16.msrb.mxu2 %v2832_v42  ;;  %v3882_v16 = vld [vmem:[%s5740_s3 + $0x384] sm:$0xf]  ;;  %v2909_v17 = vld [vmem:[%s5740_s3 + $0x390] sm:$0xf0]  ;;  %v2784_v24 = vor.u32 %v3850_v13, %v2781_v14  ;;  %993 = vmatmul.bf16.vlgmr.msra.gmra.mxu3 %v4292_v20  ;;  %v2707_v8 = vld [vmem:[%s5740_s3 + $0x1e8] sm:$0xf] }
  0x27   :  { %1037 = vmatpush.bf16.msrb.mxu3 %v2960_v46  ;;  %v3782_v25 = vld [vmem:[%s5740_s3 + $0x64] sm:$0xf]  ;;  %v2509_v26 = vld [vmem:[%s5740_s3 + $0x70] sm:$0xf0]  ;;  %v2912_v28 = vor.u32 %v3882_v16, %v2909_v17  ;;  %980 = vmatmul.bf16.vlgmr.msra.gmra.mxu2 %v4288_v18  ;;  %v3833_v10 = vld [vmem:[%s5740_s3 + $0x1f4] sm:$0xf0] }
  0x28   :  { %999 = vmatpush.bf16.msrb.mxu0 %v2560_v52  ;;  %v3814_v27 = vld [vmem:[%s5740_s3 + $0x164] sm:$0xf]  ;;  %v2637_v29 = vld [vmem:[%s5740_s3 + $0x170] sm:$0xf0]  ;;  %v2512_v34 = vor.u32 %v3782_v25, %v2509_v26  ;;  %967 = vmatmul.bf16.vlgmr.msra.gmra.mxu1 %v4294_v22  ;;  %v3865_v12 = vld [vmem:[%s5740_s3 + $0x2f4] sm:$0xf0] }
  0x29   :  { %1012 = vmatpush.bf16.msrb.mxu1 %v2688_v54  ;;  %v3846_v30 = vld [vmem:[%s5740_s3 + $0x264] sm:$0xf]  ;;  %v2765_v31 = vld [vmem:[%s5740_s3 + $0x270] sm:$0xf0]  ;;  %954 = vmatmul.bf16.vlgmr.msra.gmra.mxu0 %v4290_v19  ;;  %v2640_v35 = vor.u32 %v3814_v27, %v2637_v29  ;;  %v2963_v15 = vld [vmem:[%s5740_s3 + $0x3e8] sm:$0xf] }
  0x2a   :  { %1025 = vmatpush.bf16.msrb.mxu2 %v2816_v55  ;;  %v3878_v32 = vld [vmem:[%s5740_s3 + $0x364] sm:$0xf]  ;;  %v2893_v33 = vld [vmem:[%s5740_s3 + $0x370] sm:$0xf0]  ;;  %v2768_v36 = vor.u32 %v3846_v30, %v2765_v31  ;;  %v3897_v16 = vld [vmem:[%s5740_s3 + $0x3f4] sm:$0xf0] }
  0x2b   :  { %1038 = vmatpush.bf16.msrb.mxu3 %v2944_v59  ;;  %v3778_v37 = vld [vmem:[%s5740_s3 + $0x44] sm:$0xf]  ;;  %v2493_v38 = vld [vmem:[%s5740_s3 + $0x50] sm:$0xf0]  ;;  %v2896_v40 = vor.u32 %v3878_v32, %v2893_v33  ;;  %v2563_v25 = vld [vmem:[%s5740_s3 + $0xc8] sm:$0xf] }
  0x2c   :  { %1000 = vmatpush.bf16.msrb.mxu0 %v2544_v0  ;;  %v3810_v39 = vld [vmem:[%s5740_s3 + $0x144] sm:$0xf]  ;;  %v2621_v41 = vld [vmem:[%s5740_s3 + $0x150] sm:$0xf0]  ;;  %v2496_v46 = vor.u32 %v3778_v37, %v2493_v38  ;;  %v3797_v26 = vld [vmem:[%s5740_s3 + $0xd4] sm:$0xf0] }
  0x2d   :  { %1013 = vmatpush.bf16.msrb.mxu1 %v2672_v1  ;;  %v3842_v42 = vld [vmem:[%s5740_s3 + $0x244] sm:$0xf]  ;;  %v2749_v43 = vld [vmem:[%s5740_s3 + $0x250] sm:$0xf0]  ;;  %v2624_v47 = vor.u32 %v3810_v39, %v2621_v41  ;;  %v2691_v27 = vld [vmem:[%s5740_s3 + $0x1c8] sm:$0xf] }
  0x2e   :  { %1026 = vmatpush.bf16.msrb.mxu2 %v2800_v4  ;;  %v3874_v44 = vld [vmem:[%s5740_s3 + $0x344] sm:$0xf]  ;;  %v2877_v45 = vld [vmem:[%s5740_s3 + $0x350] sm:$0xf0]  ;;  %v2752_v48 = vor.u32 %v3842_v42, %v2749_v43  ;;  %v3829_v29 = vld [vmem:[%s5740_s3 + $0x1d4] sm:$0xf0] }
  0x2f   :  { %1039 = vmatpush.bf16.msrb.mxu3 %v2928_v11  ;;  %v3774_v49 = vld [vmem:[%s5740_s3 + $0x24] sm:$0xf]  ;;  %v2477_v50 = vld [vmem:[%s5740_s3 + $0x30] sm:$0xf0]  ;;  %v2880_v52 = vor.u32 %v3874_v44, %v2877_v45  ;;  %v2835_v11 = vld [vmem:[%s5740_s3 + $0x2e8] sm:$0xf] }
  0x30   :  { %1001 = vmatpush.bf16.msrb.mxu0 %v2528_v21  ;;  %v3806_v51 = vld [vmem:[%s5740_s3 + $0x124] sm:$0xf]  ;;  %v2605_v53 = vld [vmem:[%s5740_s3 + $0x130] sm:$0xf0]  ;;  %v2480_v58 = vor.u32 %v3774_v49, %v2477_v50  ;;  %v2580_v21 = vor.u32 %v3801_v7, %v2579_v6  ;;  %v2819_v30 = vld [vmem:[%s5740_s3 + $0x2c8] sm:$0xf] }
  0x31   :  { %1014 = vmatpush.bf16.msrb.mxu1 %v2656_v23  ;;  %v3838_v54 = vld [vmem:[%s5740_s3 + $0x224] sm:$0xf]  ;;  %v2733_v55 = vld [vmem:[%s5740_s3 + $0x230] sm:$0xf0]  ;;  %v2608_v61 = vor.u32 %v3806_v51, %v2605_v53  ;;  %v2708_v23 = vor.u32 %v3833_v10, %v2707_v8  ;;  %v3861_v31 = vld [vmem:[%s5740_s3 + $0x2d4] sm:$0xf0] }
  0x32   :  { %1027 = vmatpush.bf16.msrb.mxu2 %v2784_v24  ;;  %v3870_v56 = vld [vmem:[%s5740_s3 + $0x324] sm:$0xf]  ;;  %v2861_v57 = vld [vmem:[%s5740_s3 + $0x330] sm:$0xf0]  ;;  %v2736_v62 = vor.u32 %v3838_v54, %v2733_v55  ;;  %v2836_v24 = vor.u32 %v3865_v12, %v2835_v11  ;;  %v2947_v32 = vld [vmem:[%s5740_s3 + $0x3c8] sm:$0xf] }
  0x33   :  { %1040 = vmatpush.bf16.msrb.mxu3 %v2912_v28  ;;  %v3770_v59 = vld [vmem:[%s5740_s3 + $0x4] sm:$0xf]  ;;  %v2461_v60 = vld [vmem:[%s5740_s3 + $0x10] sm:$0xf0]  ;;  %v2864_v2 = vor.u32 %v3870_v56, %v2861_v57  ;;  %v2964_v28 = vor.u32 %v3897_v16, %v2963_v15  ;;  %v3893_v33 = vld [vmem:[%s5740_s3 + $0x3d4] sm:$0xf0] }
  0x34   :  { %1002 = vmatpush.bf16.msrb.mxu0 %v2512_v34  ;;  %v3802_v63 = vld [vmem:[%s5740_s3 + $0x104] sm:$0xf]  ;;  %v2589_v0 = vld [vmem:[%s5740_s3 + $0x110] sm:$0xf0]  ;;  %v2464_v9 = vor.u32 %v3770_v59, %v2461_v60  ;;  %v2564_v34 = vor.u32 %v3797_v26, %v2563_v25  ;;  %v2547_v37 = vld [vmem:[%s5740_s3 + $0xa8] sm:$0xf] }
  0x35   :  { %1015 = vmatpush.bf16.msrb.mxu1 %v2640_v35  ;;  %v3834_v1 = vld [vmem:[%s5740_s3 + $0x204] sm:$0xf]  ;;  %v2717_v3 = vld [vmem:[%s5740_s3 + $0x210] sm:$0xf0]  ;;  %v2592_v13 = vor.u32 %v3802_v63, %v2589_v0  ;;  %v2692_v35 = vor.u32 %v3829_v29, %v2691_v27  ;;  %v3793_v38 = vld [vmem:[%s5740_s3 + $0xb4] sm:$0xf0] }
  0x36   :  { %1028 = vmatpush.bf16.msrb.mxu2 %v2768_v36  ;;  %v3866_v4 = vld [vmem:[%s5740_s3 + $0x304] sm:$0xf]  ;;  %v2845_v5 = vld [vmem:[%s5740_s3 + $0x310] sm:$0xf0]  ;;  %v2720_v14 = vor.u32 %v3834_v1, %v2717_v3  ;;  %v2820_v36 = vor.u32 %v3861_v31, %v2819_v30  ;;  %v2675_v39 = vld [vmem:[%s5740_s3 + $0x1a8] sm:$0xf] }
  0x37   :  { %1041 = vmatpush.bf16.msrb.mxu3 %v2896_v40  ;;  %v2848_v17 = vor.u32 %v3866_v4, %v2845_v5  ;;  %v2948_v40 = vor.u32 %v3893_v33, %v2947_v32  ;;  %v3825_v41 = vld [vmem:[%s5740_s3 + $0x1b4] sm:$0xf0]  ;;  %v2803_v42 = vld [vmem:[%s5740_s3 + $0x2a8] sm:$0xf] }
  0x38   :  { %1003 = vmatpush.bf16.msrb.mxu0 %v2496_v46  ;;  %v3857_v43 = vld [vmem:[%s5740_s3 + $0x2b4] sm:$0xf0]  ;;  %v2931_v44 = vld [vmem:[%s5740_s3 + $0x3a8] sm:$0xf]  ;;  %v2548_v46 = vor.u32 %v3793_v38, %v2547_v37 }
  0x39   :  { %1016 = vmatpush.bf16.msrb.mxu1 %v2624_v47  ;;  %v3889_v45 = vld [vmem:[%s5740_s3 + $0x3b4] sm:$0xf0]  ;;  %v2676_v47 = vor.u32 %v3825_v41, %v2675_v39  ;;  %v2531_v49 = vld [vmem:[%s5740_s3 + $0x88] sm:$0xf] }
  0x3a   :  { %1029 = vmatpush.bf16.msrb.mxu2 %v2752_v48  ;;  %v2804_v48 = vor.u32 %v3857_v43, %v2803_v42  ;;  %v3789_v50 = vld [vmem:[%s5740_s3 + $0x94] sm:$0xf0]  ;;  %v2659_v51 = vld [vmem:[%s5740_s3 + $0x188] sm:$0xf] }
  0x3b   :  { %1042 = vmatpush.bf16.msrb.mxu3 %v2880_v52  ;;  %v2932_v52 = vor.u32 %v3889_v45, %v2931_v44  ;;  %v3821_v53 = vld [vmem:[%s5740_s3 + $0x194] sm:$0xf0]  ;;  %v2787_v54 = vld [vmem:[%s5740_s3 + $0x288] sm:$0xf] }
  0x3c   :  { %1004 = vmatpush.bf16.msrb.mxu0 %v2480_v58  ;;  %v3853_v55 = vld [vmem:[%s5740_s3 + $0x294] sm:$0xf0]  ;;  %v2915_v56 = vld [vmem:[%s5740_s3 + $0x388] sm:$0xf]  ;;  %v2532_v58 = vor.u32 %v3789_v50, %v2531_v49  ;;  %v2660_v59 = vor.u32 %v3821_v53, %v2659_v51  ;;  %v2709_v50 = vld [vmem:[%s5740_s3 + $0x1f8] sm:$0xf0] }
  0x3d   :  { %1017 = vmatpush.bf16.msrb.mxu1 %v2608_v61  ;;  %v3885_v57 = vld [vmem:[%s5740_s3 + $0x394] sm:$0xf0]  ;;  %v2788_v60 = vor.u32 %v3853_v55, %v2787_v54  ;;  %v2515_v61 = vld [vmem:[%s5740_s3 + $0x68] sm:$0xf]  ;;  %v3863_v51 = vld [vmem:[%s5740_s3 + $0x2ec] sm:$0xf] }
  0x3e   :  { %1030 = vmatpush.bf16.msrb.mxu2 %v2736_v62  ;;  %v3785_v62 = vld [vmem:[%s5740_s3 + $0x74] sm:$0xf0]  ;;  %v2643_v63 = vld [vmem:[%s5740_s3 + $0x168] sm:$0xf]  ;;  %v2916_v0 = vor.u32 %v3885_v57, %v2915_v56  ;;  %v3895_v55 = vld [vmem:[%s5740_s3 + $0x3ec] sm:$0xf] }
  0x3f   :  { %1043 = vmatpush.bf16.msrb.mxu3 %v2864_v2  ;;  %v3817_v1 = vld [vmem:[%s5740_s3 + $0x174] sm:$0xf0]  ;;  %v2771_v2 = vld [vmem:[%s5740_s3 + $0x268] sm:$0xf]  ;;  %v2516_v6 = vor.u32 %v3785_v62, %v2515_v61  ;;  %v2965_v56 = vld [vmem:[%s5740_s3 + $0x3f8] sm:$0xf0] }
  0x40   :  { %1005 = vmatpush.bf16.msrb.mxu0 %v2464_v9  ;;  %v3849_v3 = vld [vmem:[%s5740_s3 + $0x274] sm:$0xf0]  ;;  %v2899_v4 = vld [vmem:[%s5740_s3 + $0x368] sm:$0xf]  ;;  %v2644_v7 = vor.u32 %v3817_v1, %v2643_v63  ;;  %v3795_v61 = vld [vmem:[%s5740_s3 + $0xcc] sm:$0xf] }
  0x41   :  { %1018 = vmatpush.bf16.msrb.mxu1 %v2592_v13  ;;  %v3881_v5 = vld [vmem:[%s5740_s3 + $0x374] sm:$0xf0]  ;;  %v2772_v8 = vor.u32 %v3849_v3, %v2771_v2  ;;  %v2499_v9 = vld [vmem:[%s5740_s3 + $0x48] sm:$0xf]  ;;  %v2565_v62 = vld [vmem:[%s5740_s3 + $0xd8] sm:$0xf0] }
  0x42   :  { %1031 = vmatpush.bf16.msrb.mxu2 %v2720_v14  ;;  %v3781_v10 = vld [vmem:[%s5740_s3 + $0x54] sm:$0xf0]  ;;  %v2627_v11 = vld [vmem:[%s5740_s3 + $0x148] sm:$0xf]  ;;  %v2900_v12 = vor.u32 %v3881_v5, %v2899_v4  ;;  %v3827_v63 = vld [vmem:[%s5740_s3 + $0x1cc] sm:$0xf] }
  0x43   :  { %1044 = vmatpush.bf16.msrb.mxu3 %v2848_v17  ;;  %1006 = vmatmul.bf16.vlgmr.msrb.gmra.mxu0 %v4290_v19  ;;  %v3813_v13 = vld [vmem:[%s5740_s3 + $0x154] sm:$0xf0]  ;;  %v2755_v14 = vld [vmem:[%s5740_s3 + $0x248] sm:$0xf]  ;;  %v2693_v1 = vld [vmem:[%s5740_s3 + $0x1d8] sm:$0xf0] }
  0x44   :  { %1050 = vmatpush.bf16.msra.mxu0 %v2580_v21  ;;  %1019 = vmatmul.bf16.vlgmr.msrb.gmra.mxu1 %v4294_v22  ;;  %v3845_v15 = vld [vmem:[%s5740_s3 + $0x254] sm:$0xf0]  ;;  %v2883_v16 = vld [vmem:[%s5740_s3 + $0x348] sm:$0xf]  ;;  %v2500_v21 = vor.u32 %v3781_v10, %v2499_v9  ;;  %v3859_v2 = vld [vmem:[%s5740_s3 + $0x2cc] sm:$0xf] }
  0x45   :  { %1063 = vmatpush.bf16.msra.mxu1 %v2708_v23  ;;  %1032 = vmatmul.bf16.vlgmr.msrb.gmra.mxu2 %v4288_v18  ;;  %v3877_v17 = vld [vmem:[%s5740_s3 + $0x354] sm:$0xf0]  ;;  %v2628_v23 = vor.u32 %v3813_v13, %v2627_v11  ;;  %v2483_v25 = vld [vmem:[%s5740_s3 + $0x28] sm:$0xf]  ;;  %v2821_v3 = vld [vmem:[%s5740_s3 + $0x2d8] sm:$0xf0] }
  0x46   :  { %1076 = vmatpush.bf16.msra.mxu2 %v2836_v24  ;;  %1045 = vmatmul.bf16.vlgmr.msrb.gmra.mxu3 %v4292_v20  ;;  %v2756_v24 = vor.u32 %v3845_v15, %v2755_v14  ;;  %v3777_v26 = vld [vmem:[%s5740_s3 + $0x34] sm:$0xf0]  ;;  %v2611_v27 = vld [vmem:[%s5740_s3 + $0x128] sm:$0xf]  ;;  %v3891_v4 = vld [vmem:[%s5740_s3 + $0x3cc] sm:$0xf] }
  0x47   :  { %1089 = vmatpush.bf16.msra.mxu3 %v2964_v28  ;;  %v2884_v28 = vor.u32 %v3877_v17, %v2883_v16  ;;  %v3809_v29 = vld [vmem:[%s5740_s3 + $0x134] sm:$0xf0]  ;;  %v2739_v30 = vld [vmem:[%s5740_s3 + $0x228] sm:$0xf]  ;;  %v2949_v5 = vld [vmem:[%s5740_s3 + $0x3d8] sm:$0xf0] }
  0x48   :  { %1051 = vmatpush.bf16.msra.mxu0 %v2564_v34  ;;  %v3841_v31 = vld [vmem:[%s5740_s3 + $0x234] sm:$0xf0]  ;;  %v2867_v32 = vld [vmem:[%s5740_s3 + $0x328] sm:$0xf]  ;;  %v2484_v34 = vor.u32 %v3777_v26, %v2483_v25  ;;  %v2612_v37 = vor.u32 %v3809_v29, %v2611_v27  ;;  %v3791_v9 = vld [vmem:[%s5740_s3 + $0xac] sm:$0xf] }
  0x49   :  { %1064 = vmatpush.bf16.msra.mxu1 %v2692_v35  ;;  %v3873_v33 = vld [vmem:[%s5740_s3 + $0x334] sm:$0xf0]  ;;  %v2467_v35 = vld [vmem:[%s5740_s3 + $0x8] sm:$0xf]  ;;  %v2740_v38 = vor.u32 %v3841_v31, %v2739_v30  ;;  %v2549_v10 = vld [vmem:[%s5740_s3 + $0xb8] sm:$0xf0] }
  0x4a   :  { %1077 = vmatpush.bf16.msra.mxu2 %v2820_v36  ;;  %v3773_v36 = vld [vmem:[%s5740_s3 + $0x14] sm:$0xf0]  ;;  %v2595_v39 = vld [vmem:[%s5740_s3 + $0x108] sm:$0xf]  ;;  %v2868_v42 = vor.u32 %v3873_v33, %v2867_v32  ;;  %v3823_v11 = vld [vmem:[%s5740_s3 + $0x1ac] sm:$0xf] }
  0x4b   :  { %1090 = vmatpush.bf16.msra.mxu3 %v2948_v40  ;;  %v3805_v40 = vld [vmem:[%s5740_s3 + $0x114] sm:$0xf0]  ;;  %v2723_v41 = vld [vmem:[%s5740_s3 + $0x208] sm:$0xf]  ;;  %v2468_v49 = vor.u32 %v3773_v36, %v2467_v35  ;;  %v2677_v13 = vld [vmem:[%s5740_s3 + $0x1b8] sm:$0xf0] }
  0x4c   :  { %1052 = vmatpush.bf16.msra.mxu0 %v2548_v46  ;;  %v3837_v43 = vld [vmem:[%s5740_s3 + $0x214] sm:$0xf0]  ;;  %v2851_v44 = vld [vmem:[%s5740_s3 + $0x308] sm:$0xf]  ;;  %v3799_v46 = vld [vmem:[%s5740_s3 + $0xec] sm:$0xf]  ;;  %v2596_v53 = vor.u32 %v3805_v40, %v2595_v39 }
  0x4d   :  { %1065 = vmatpush.bf16.msra.mxu1 %v2676_v47  ;;  %v3869_v45 = vld [vmem:[%s5740_s3 + $0x314] sm:$0xf0]  ;;  %v2581_v47 = vld [vmem:[%s5740_s3 + $0xf8] sm:$0xf0]  ;;  %v2724_v54 = vor.u32 %v3837_v43, %v2723_v41  ;;  %v3855_v14 = vld [vmem:[%s5740_s3 + $0x2ac] sm:$0xf] }
  0x4e   :  { %1078 = vmatpush.bf16.msra.mxu2 %v2804_v48  ;;  %v3831_v48 = vld [vmem:[%s5740_s3 + $0x1ec] sm:$0xf]  ;;  %v2852_v57 = vor.u32 %v3869_v45, %v2851_v44  ;;  %v2805_v15 = vld [vmem:[%s5740_s3 + $0x2b8] sm:$0xf0] }
  0x4f   :  { %1091 = vmatpush.bf16.msra.mxu3 %v2932_v52  ;;  %v2837_v52 = vld [vmem:[%s5740_s3 + $0x2f8] sm:$0xf0]  ;;  %v3887_v16 = vld [vmem:[%s5740_s3 + $0x3ac] sm:$0xf] }
  0x50   :  { %1053 = vmatpush.bf16.msra.mxu0 %v2532_v58  ;;  %v2584_v58 = vor.u32 %v3799_v46, %v2581_v47  ;;  %v2933_v17 = vld [vmem:[%s5740_s3 + $0x3b8] sm:$0xf0]  ;;  %v3787_v25 = vld [vmem:[%s5740_s3 + $0x8c] sm:$0xf] }
  0x51   :  { %1066 = vmatpush.bf16.msra.mxu1 %v2660_v59  ;;  %v2712_v59 = vor.u32 %v3831_v48, %v2709_v50  ;;  %v2533_v26 = vld [vmem:[%s5740_s3 + $0x98] sm:$0xf0]  ;;  %v3819_v27 = vld [vmem:[%s5740_s3 + $0x18c] sm:$0xf] }
  0x52   :  { %1079 = vmatpush.bf16.msra.mxu2 %v2788_v60  ;;  %v2840_v60 = vor.u32 %v3863_v51, %v2837_v52  ;;  %v2661_v29 = vld [vmem:[%s5740_s3 + $0x198] sm:$0xf0]  ;;  %v3851_v30 = vld [vmem:[%s5740_s3 + $0x28c] sm:$0xf] }
  0x53   :  { %1092 = vmatpush.bf16.msra.mxu3 %v2916_v0  ;;  %v2968_v0 = vor.u32 %v3895_v55, %v2965_v56  ;;  %v2789_v31 = vld [vmem:[%s5740_s3 + $0x298] sm:$0xf0]  ;;  %v3883_v32 = vld [vmem:[%s5740_s3 + $0x38c] sm:$0xf]  ;;  %v2664_v35 = vor.u32 %v3819_v27, %v2661_v29  ;;  %v3339_v27 = vld [vmem:[%s5742_s2 + $0x2e0] sm:$0xf] }
  0x54   :  { %1054 = vmatpush.bf16.msra.mxu0 %v2516_v6  ;;  %v2568_v6 = vor.u32 %v3795_v61, %v2565_v62  ;;  %v2917_v33 = vld [vmem:[%s5740_s3 + $0x398] sm:$0xf0]  ;;  %v2792_v36 = vor.u32 %v3851_v30, %v2789_v31  ;;  %v3815_v39 = vld [vmem:[%s5740_s3 + $0x16c] sm:$0xf]  ;;  %v3467_v31 = vld [vmem:[%s5742_s2 + $0x3e0] sm:$0xf] }
  0x55   :  { %1067 = vmatpush.bf16.msra.mxu1 %v2644_v7  ;;  %v2696_v7 = vor.u32 %v3827_v63, %v2693_v1  ;;  %v2920_v40 = vor.u32 %v3883_v32, %v2917_v33  ;;  %v2645_v41 = vld [vmem:[%s5740_s3 + $0x178] sm:$0xf0]  ;;  %v3879_v44 = vld [vmem:[%s5740_s3 + $0x36c] sm:$0xf]  ;;  %v3768_v32 = vld [vmem:[%s5742_s2 + $0x3ec] sm:$0xf0] }
  0x56   :  { %1080 = vmatpush.bf16.msra.mxu2 %v2772_v8  ;;  %v2824_v8 = vor.u32 %v3859_v2, %v2821_v3  ;;  %v2773_v43 = vld [vmem:[%s5740_s3 + $0x278] sm:$0xf0]  ;;  %v2648_v47 = vor.u32 %v3815_v39, %v2645_v41  ;;  %v3811_v51 = vld [vmem:[%s5740_s3 + $0x14c] sm:$0xf]  ;;  %v3195_v39 = vld [vmem:[%s5742_s2 + $0x1c0] sm:$0xf] }
  0x57   :  { %1093 = vmatpush.bf16.msra.mxu3 %v2900_v12  ;;  %v2952_v12 = vor.u32 %v3891_v4, %v2949_v5  ;;  %v2901_v45 = vld [vmem:[%s5740_s3 + $0x378] sm:$0xf0]  ;;  %v3875_v56 = vld [vmem:[%s5740_s3 + $0x34c] sm:$0xf]  ;;  %v3700_v41 = vld [vmem:[%s5742_s2 + $0x1cc] sm:$0xf0] }
  0x58   :  { %1055 = vmatpush.bf16.msra.mxu0 %v2500_v21  ;;  %v2552_v21 = vor.u32 %v3791_v9, %v2549_v10  ;;  %v2501_v50 = vld [vmem:[%s5740_s3 + $0x58] sm:$0xf0]  ;;  %v2904_v52 = vor.u32 %v3879_v44, %v2901_v45  ;;  %v3775_v61 = vld [vmem:[%s5740_s3 + $0x2c] sm:$0xf]  ;;  %v3451_v44 = vld [vmem:[%s5742_s2 + $0x3c0] sm:$0xf] }
  0x59   :  { %1068 = vmatpush.bf16.msra.mxu1 %v2628_v23  ;;  %v2680_v23 = vor.u32 %v3823_v11, %v2677_v13  ;;  %v2757_v55 = vld [vmem:[%s5740_s3 + $0x258] sm:$0xf0]  ;;  %v3807_v63 = vld [vmem:[%s5740_s3 + $0x12c] sm:$0xf]  ;;  %v3764_v45 = vld [vmem:[%s5742_s2 + $0x3cc] sm:$0xf0] }
  0x5a   :  { %1081 = vmatpush.bf16.msra.mxu2 %v2756_v24  ;;  %v2808_v24 = vor.u32 %v3855_v14, %v2805_v15  ;;  %v2485_v62 = vld [vmem:[%s5740_s3 + $0x38] sm:$0xf0]  ;;  %v3839_v2 = vld [vmem:[%s5740_s3 + $0x22c] sm:$0xf] }
  0x5b   :  { %1094 = vmatpush.bf16.msra.mxu3 %v2884_v28  ;;  %v2936_v28 = vor.u32 %v3887_v16, %v2933_v17  ;;  %v2613_v1 = vld [vmem:[%s5740_s3 + $0x138] sm:$0xf0]  ;;  %v3871_v4 = vld [vmem:[%s5740_s3 + $0x32c] sm:$0xf] }
  0x5c   :  { %1056 = vmatpush.bf16.msra.mxu0 %v2484_v34  ;;  %v2536_v34 = vor.u32 %v3787_v25, %v2533_v26  ;;  %v2741_v3 = vld [vmem:[%s5740_s3 + $0x238] sm:$0xf0]  ;;  %v2616_v9 = vor.u32 %v3807_v63, %v2613_v1  ;;  %v3803_v11 = vld [vmem:[%s5740_s3 + $0x10c] sm:$0xf]  ;;  %v3704_v26 = vld [vmem:[%s5742_s2 + $0x1ec] sm:$0xf0] }
  0x5d   :  { %1069 = vmatpush.bf16.msra.mxu1 %v2612_v37  ;;  %v3783_v37 = vld [vmem:[%s5740_s3 + $0x6c] sm:$0xf]  ;;  %v2869_v5 = vld [vmem:[%s5740_s3 + $0x338] sm:$0xf0]  ;;  %v2744_v10 = vor.u32 %v3839_v2, %v2741_v3  ;;  %v3724_v63 = vld [vmem:[%s5742_s2 + $0x28c] sm:$0xf0] }
  0x5e   :  { %1082 = vmatpush.bf16.msra.mxu2 %v2740_v38  ;;  %v2517_v38 = vld [vmem:[%s5740_s3 + $0x78] sm:$0xf0]  ;;  %v3835_v13 = vld [vmem:[%s5740_s3 + $0x20c] sm:$0xf]  ;;  %v2872_v14 = vor.u32 %v3871_v4, %v2869_v5  ;;  %v3756_v1 = vld [vmem:[%s5742_s2 + $0x38c] sm:$0xf0] }
  0x5f   :  { %1095 = vmatpush.bf16.msra.mxu3 %v2868_v42  ;;  %v3847_v42 = vld [vmem:[%s5740_s3 + $0x26c] sm:$0xf]  ;;  %v2520_v46 = vor.u32 %v3783_v37, %v2517_v38  ;;  %v2725_v15 = vld [vmem:[%s5740_s3 + $0x218] sm:$0xf0]  ;;  %v3067_v37 = vld [vmem:[%s5742_s2 + $0xc0] sm:$0xf] }
  0x60   :  { %1057 = vmatpush.bf16.msra.mxu0 %v2468_v49  ;;  %v2776_v48 = vor.u32 %v3847_v42, %v2773_v43  ;;  %v3779_v49 = vld [vmem:[%s5740_s3 + $0x4c] sm:$0xf]  ;;  %v2853_v17 = vld [vmem:[%s5740_s3 + $0x318] sm:$0xf0]  ;;  %v2728_v30 = vor.u32 %v3835_v13, %v2725_v15  ;;  %v3668_v38 = vld [vmem:[%s5742_s2 + $0xcc] sm:$0xf0] }
  0x61   :  { %1070 = vmatpush.bf16.msra.mxu1 %v2596_v53  ;;  %v2629_v53 = vld [vmem:[%s5740_s3 + $0x158] sm:$0xf0]  ;;  %v3867_v16 = vld [vmem:[%s5740_s3 + $0x30c] sm:$0xf]  ;;  %v3323_v42 = vld [vmem:[%s5742_s2 + $0x2c0] sm:$0xf] }
  0x62   :  { %1083 = vmatpush.bf16.msra.mxu2 %v2724_v54  ;;  %v3843_v54 = vld [vmem:[%s5740_s3 + $0x24c] sm:$0xf]  ;;  %v2856_v33 = vor.u32 %v3867_v16, %v2853_v17  ;;  %v3732_v43 = vld [vmem:[%s5742_s2 + $0x2cc] sm:$0xf0]  ;;  %v3019_v5 = vld [vmem:[%s5742_s2 + $0x60] sm:$0xf] }
  0x63   :  { %1096 = vmatpush.bf16.msra.mxu3 %v2852_v57  ;;  %1058 = vmatmul.bf16.vlgmr.msra.gmra.mxu0 %v4290_v19  ;;  %v2885_v57 = vld [vmem:[%s5740_s3 + $0x358] sm:$0xf0]  ;;  %v3752_v13 = vld [vmem:[%s5742_s2 + $0x36c] sm:$0xf0]  ;;  %v3003_v17 = vld [vmem:[%s5742_s2 + $0x40] sm:$0xf] }
  0x64   :  { %1102 = vmatpush.bf16.msrb.mxu0 %v2584_v58  ;;  %1071 = vmatmul.bf16.vlgmr.msra.gmra.mxu1 %v4294_v22  ;;  %v2504_v58 = vor.u32 %v3779_v49, %v2501_v50  ;;  %v3051_v49 = vld [vmem:[%s5742_s2 + $0xa0] sm:$0xf]  ;;  %v3664_v50 = vld [vmem:[%s5742_s2 + $0xac] sm:$0xf0] }
  0x65   :  { %1115 = vmatpush.bf16.msrb.mxu1 %v2712_v59  ;;  %1084 = vmatmul.bf16.vlgmr.msra.gmra.mxu2 %v4288_v18  ;;  %v2632_v59 = vor.u32 %v3811_v51, %v2629_v53  ;;  %v3179_v51 = vld [vmem:[%s5742_s2 + $0x1a0] sm:$0xf]  ;;  %v3696_v53 = vld [vmem:[%s5742_s2 + $0x1ac] sm:$0xf0] }
  0x66   :  { %1128 = vmatpush.bf16.msrb.mxu2 %v2840_v60  ;;  %1097 = vmatmul.bf16.vlgmr.msra.gmra.mxu3 %v4292_v20  ;;  %v2760_v60 = vor.u32 %v3843_v54, %v2757_v55  ;;  %v3307_v54 = vld [vmem:[%s5742_s2 + $0x2a0] sm:$0xf]  ;;  %v3728_v55 = vld [vmem:[%s5742_s2 + $0x2ac] sm:$0xf0] }
  0x67   :  { %1141 = vmatpush.bf16.msrb.mxu3 %v2968_v0  ;;  %v2888_v0 = vor.u32 %v3875_v56, %v2885_v57  ;;  %v3435_v56 = vld [vmem:[%s5742_s2 + $0x3a0] sm:$0xf]  ;;  %v3760_v57 = vld [vmem:[%s5742_s2 + $0x3ac] sm:$0xf0] }
  0x68   :  { %1103 = vmatpush.bf16.msrb.mxu0 %v2568_v6  ;;  %v2488_v6 = vor.u32 %v3775_v61, %v2485_v62  ;;  %v3660_v61 = vld [vmem:[%s5742_s2 + $0x8c] sm:$0xf0]  ;;  %v3291_v62 = vld [vmem:[%s5742_s2 + $0x280] sm:$0xf] }
  0x69   :  { %1116 = vmatpush.bf16.msrb.mxu1 %v2696_v7  ;;  %v3771_v7 = vld [vmem:[%s5740_s3 + $0xc] sm:$0xf]  ;;  %v3292_v4 = vor.u32 %v3724_v63, %v3291_v62  ;;  %v3766_v62 = vld [vmem:[%s5742_s2 + $0x3e4] sm:$0xf]  ;;  %v3469_v63 = vld [vmem:[%s5742_s2 + $0x3f0] sm:$0xf0] }
  0x6a   :  { %1129 = vmatpush.bf16.msrb.mxu2 %v2824_v8  ;;  %v2469_v8 = vld [vmem:[%s5740_s3 + $0x18] sm:$0xf0] }
  0x6b   :  { %1142 = vmatpush.bf16.msrb.mxu3 %v2952_v12  ;;  %v2597_v12 = vld [vmem:[%s5740_s3 + $0x118] sm:$0xf0]  ;;  %v2472_v25 = vor.u32 %v3771_v7, %v2469_v8  ;;  %v3147_v7 = vld [vmem:[%s5742_s2 + $0x160] sm:$0xf] }
  0x6c   :  { %1104 = vmatpush.bf16.msrb.mxu0 %v2552_v21  ;;  %v3083_v21 = vld [vmem:[%s5742_s2 + $0xe0] sm:$0xf]  ;;  %v2600_v29 = vor.u32 %v3803_v11, %v2597_v12  ;;  %v3720_v11 = vld [vmem:[%s5742_s2 + $0x26c] sm:$0xf0] }
  0x6d   :  { %1117 = vmatpush.bf16.msrb.mxu1 %v2680_v23  ;;  %v3672_v23 = vld [vmem:[%s5742_s2 + $0xec] sm:$0xf0]  ;;  %v3403_v12 = vld [vmem:[%s5742_s2 + $0x360] sm:$0xf] }
  0x6e   :  { %1130 = vmatpush.bf16.msrb.mxu2 %v2808_v24  ;;  %v3211_v24 = vld [vmem:[%s5742_s2 + $0x1e0] sm:$0xf] }
  0x6f   :  { %1143 = vmatpush.bf16.msrb.mxu3 %v2936_v28  ;;  %v3736_v28 = vld [vmem:[%s5742_s2 + $0x2ec] sm:$0xf0] }
  0x70   :  { %1105 = vmatpush.bf16.msrb.mxu0 %v2536_v34  ;;  %v3084_v34 = vor.u32 %v3672_v23, %v3083_v21  ;;  %v3652_v21 = vld [vmem:[%s5742_s2 + $0x4c] sm:$0xf0]  ;;  %v3131_v23 = vld [vmem:[%s5742_s2 + $0x140] sm:$0xf] }
  0x71   :  { %1118 = vmatpush.bf16.msrb.mxu1 %v2664_v35  ;;  %v3212_v35 = vor.u32 %v3704_v26, %v3211_v24  ;;  %v3404_v24 = vor.u32 %v3752_v13, %v3403_v12  ;;  %v3259_v26 = vld [vmem:[%s5742_s2 + $0x240] sm:$0xf]  ;;  %v3197_v12 = vld [vmem:[%s5742_s2 + $0x1d0] sm:$0xf0]  ;;  %v3730_v13 = vld [vmem:[%s5742_s2 + $0x2c4] sm:$0xf] }
  0x72   :  { %1131 = vmatpush.bf16.msrb.mxu2 %v2792_v36  ;;  %v3340_v36 = vor.u32 %v3736_v28, %v3339_v27  ;;  %v3716_v27 = vld [vmem:[%s5742_s2 + $0x24c] sm:$0xf0]  ;;  %v3387_v28 = vld [vmem:[%s5742_s2 + $0x340] sm:$0xf] }
  0x73   :  { %1144 = vmatpush.bf16.msrb.mxu3 %v2920_v40  ;;  %v3468_v40 = vor.u32 %v3768_v32, %v3467_v31  ;;  %v3260_v32 = vor.u32 %v3716_v27, %v3259_v26  ;;  %v3662_v27 = vld [vmem:[%s5742_s2 + $0xa4] sm:$0xf] }
  0x74   :  { %1106 = vmatpush.bf16.msrb.mxu0 %v2520_v46  ;;  %v3068_v46 = vor.u32 %v3668_v38, %v3067_v37  ;;  %v3680_v37 = vld [vmem:[%s5742_s2 + $0x12c] sm:$0xf0]  ;;  %v3243_v38 = vld [vmem:[%s5742_s2 + $0x220] sm:$0xf] }
  0x75   :  { %1119 = vmatpush.bf16.msrb.mxu1 %v2648_v47  ;;  %v3196_v47 = vor.u32 %v3700_v41, %v3195_v39  ;;  %v3712_v39 = vld [vmem:[%s5742_s2 + $0x22c] sm:$0xf0] }
  0x76   :  { %1132 = vmatpush.bf16.msrb.mxu2 %v2776_v48  ;;  %v3324_v48 = vor.u32 %v3732_v43, %v3323_v42  ;;  %v3744_v41 = vld [vmem:[%s5742_s2 + $0x32c] sm:$0xf0]  ;;  %v2971_v42 = vld [vmem:[%s5742_s2] sm:$0xf] }
  0x77   :  { %1145 = vmatpush.bf16.msrb.mxu3 %v2904_v52  ;;  %v3452_v52 = vor.u32 %v3764_v45, %v3451_v44  ;;  %v3644_v44 = vld [vmem:[%s5742_s2 + $0xc] sm:$0xf0]  ;;  %v3099_v45 = vld [vmem:[%s5742_s2 + $0x100] sm:$0xf] }
  0x78   :  { %1107 = vmatpush.bf16.msrb.mxu0 %v2504_v58  ;;  %v3052_v58 = vor.u32 %v3664_v50, %v3051_v49  ;;  %v3227_v49 = vld [vmem:[%s5742_s2 + $0x200] sm:$0xf]  ;;  %v3708_v50 = vld [vmem:[%s5742_s2 + $0x20c] sm:$0xf0] }
  0x79   :  { %1120 = vmatpush.bf16.msrb.mxu1 %v2632_v59  ;;  %v3180_v59 = vor.u32 %v3696_v53, %v3179_v51  ;;  %v32_v51 = vld [vmem:[%s5743_s0] sm:$0xff] }
  0x7a   :  { %1133 = vmatpush.bf16.msrb.mxu2 %v2760_v60  ;;  %v3035_v60 = vld [vmem:[%s5742_s2 + $0x80] sm:$0xf] }
  0x7b   :  { %1146 = vmatpush.bf16.msrb.mxu3 %v2888_v0  ;;  %v3419_v0 = vld [vmem:[%s5742_s2 + $0x380] sm:$0xf]  ;;  %v3036_v2 = vor.u32 %v3660_v61, %v3035_v60  ;;  %v3734_v60 = vld [vmem:[%s5742_s2 + $0x2e4] sm:$0xf]  ;;  %v3341_v61 = vld [vmem:[%s5742_s2 + $0x2f0] sm:$0xf0] }
  0x7c   :  { %1108 = vmatpush.bf16.msrb.mxu0 %v2488_v6  ;;  %v3656_v6 = vld [vmem:[%s5742_s2 + $0x6c] sm:$0xf0]  ;;  %v3420_v8 = vor.u32 %v3756_v1, %v3419_v0  ;;  %v3355_v53 = vld [vmem:[%s5742_s2 + $0x300] sm:$0xf]  ;;  %v1157_v1 = vunpack.c.h.b16 %v32_v51 }
  0x7d   :  { %1121 = vmatpush.bf16.msrb.mxu1 %v2616_v9  ;;  %v3688_v9 = vld [vmem:[%s5742_s2 + $0x16c] sm:$0xf0] }
  0x7e   :  { %1134 = vmatpush.bf16.msrb.mxu2 %v2744_v10  ;;  %v3275_v10 = vld [vmem:[%s5742_s2 + $0x260] sm:$0xf]  ;;  %v3148_v15 = vor.u32 %v3688_v9, %v3147_v7  ;;  %v3666_v7 = vld [vmem:[%s5742_s2 + $0xc4] sm:$0xf] }
  0x7f   :  { %1147 = vmatpush.bf16.msrb.mxu3 %v2872_v14  ;;  %v3020_v14 = vor.u32 %v3656_v6, %v3019_v5  ;;  %v3276_v16 = vor.u32 %v3720_v11, %v3275_v10  ;;  %v3344_v6 = vor.u32 %v3734_v60, %v3341_v61  ;;  %v3698_v9 = vld [vmem:[%s5742_s2 + $0x1c4] sm:$0xf]  ;;  %v3472_v10 = vor.u32 %v3766_v62, %v3469_v63  ;;  %v3133_v63 = vld [vmem:[%s5742_s2 + $0x150] sm:$0xf0] }
  0x80   :  { %1109 = vmatpush.bf16.msrb.mxu0 %v2472_v25  ;;  %v3684_v25 = vld [vmem:[%s5742_s2 + $0x14c] sm:$0xf0] }
  0x81   :  { %1122 = vmatpush.bf16.msrb.mxu1 %v2600_v29  ;;  %v3748_v29 = vld [vmem:[%s5742_s2 + $0x34c] sm:$0xf0]  ;;  %v3132_v31 = vor.u32 %v3684_v25, %v3131_v23  ;;  %v3200_v25 = vor.u32 %v3698_v9, %v3197_v12  ;;  %v2989_v9 = vld [vmem:[%s5742_s2 + $0x30] sm:$0xf0] }
  0x82   :  { %1135 = vmatpush.bf16.msrb.mxu2 %v2728_v30  ;;  %v3004_v30 = vor.u32 %v3652_v21, %v3003_v17  ;;  %v3762_v17 = vld [vmem:[%s5742_s2 + $0x3c4] sm:$0xf]  ;;  %v3453_v21 = vld [vmem:[%s5742_s2 + $0x3d0] sm:$0xf0] }
  0x83   :  { %1148 = vmatpush.bf16.msrb.mxu3 %v2856_v33  ;;  %1110 = vmatmul.bf16.vlgmr.msrb.gmra.mxu0 %v4290_v19  ;;  %v3308_v19 = vor.u32 %v3728_v55, %v3307_v54  ;;  %v2987_v33 = vld [vmem:[%s5742_s2 + $0x20] sm:$0xf]  ;;  %v3740_v54 = vld [vmem:[%s5742_s2 + $0x30c] sm:$0xf0]  ;;  %v33_v55 = vld [vmem:[%s5743_s0 + $0x8] sm:$0xff] }
  0x84   :  { %1808 = vmatpush.bf16.msra.mxu0 %v3084_v34  ;;  %1123 = vmatmul.bf16.vlgmr.msrb.gmra.mxu1 %v4294_v22  ;;  %v3436_v22 = vor.u32 %v3760_v57, %v3435_v56  ;;  %v3648_v34 = vld [vmem:[%s5742_s2 + $0x2c] sm:$0xf0]  ;;  %v3670_v56 = vld [vmem:[%s5742_s2 + $0xe4] sm:$0xf]  ;;  %v3085_v57 = vld [vmem:[%s5742_s2 + $0xf0] sm:$0xf0]  ;;  %v1158_v0 = vunpack.c.l.b16 %v33_v55 }
  0x85   :  { %1821 = vmatpush.bf16.msra.mxu1 %v3212_v35  ;;  %1136 = vmatmul.bf16.vlgmr.msrb.gmra.mxu2 %v4288_v18  ;;  %v3163_v18 = vld [vmem:[%s5742_s2 + $0x180] sm:$0xf]  ;;  %v2988_v43 = vor.u32 %v3648_v34, %v2987_v33  ;;  %v3309_v33 = vld [vmem:[%s5742_s2 + $0x2b0] sm:$0xf0]  ;;  %v3758_v34 = vld [vmem:[%s5742_s2 + $0x3a4] sm:$0xf] }
  0x86   :  { %1834 = vmatpush.bf16.msra.mxu2 %v3340_v36  ;;  %1149 = vmatmul.bf16.vlgmr.msrb.gmra.mxu3 %v4292_v20  ;;  %v3692_v20 = vld [vmem:[%s5742_s2 + $0x18c] sm:$0xf0]  ;;  %v3115_v35 = vld [vmem:[%s5742_s2 + $0x120] sm:$0xf]  ;;  %v3388_v36 = vor.u32 %v3748_v29, %v3387_v28  ;;  %v3053_v28 = vld [vmem:[%s5742_s2 + $0xb0] sm:$0xf0] }
  0x87   :  { %1847 = vmatpush.bf16.msra.mxu3 %v3468_v40  ;;  %v3164_v3 = vor.u32 %v3692_v20, %v3163_v18  ;;  %v3371_v40 = vld [vmem:[%s5742_s2 + $0x320] sm:$0xf]  ;;  %v1156_v18 = vunpack.c.l.b16 %v32_v51  ;;  %v3228_v20 = vor.u32 %v3708_v50, %v3227_v49  ;;  %v3694_v29 = vld [vmem:[%s5742_s2 + $0x1a4] sm:$0xf] }
  0x88   :  { %1809 = vmatpush.bf16.msra.mxu0 %v3068_v46  ;;  %v3676_v46 = vld [vmem:[%s5742_s2 + $0x10c] sm:$0xf0]  ;;  %v3654_v51 = vld [vmem:[%s5742_s2 + $0x64] sm:$0xf] }
  0x89   :  { %1822 = vmatpush.bf16.msra.mxu1 %v3196_v47  ;;  %v3116_v47 = vor.u32 %v3680_v37, %v3115_v35  ;;  %v5023_v11 = vpack.c.b16 %v1156_v18, %v1156_v18  ;;  %v3437_v35 = vld [vmem:[%s5742_s2 + $0x3b0] sm:$0xf0]  ;;  %v3650_v18 = vld [vmem:[%s5742_s2 + $0x44] sm:$0xf] }
  0x8a   :  { %1835 = vmatpush.bf16.msra.mxu2 %v3324_v48  ;;  %v3244_v48 = vor.u32 %v3712_v39, %v3243_v38  ;;  %v3658_v39 = vld [vmem:[%s5742_s2 + $0x84] sm:$0xf] }
  0x8b   :  { %1848 = vmatpush.bf16.msra.mxu3 %v3452_v52  ;;  %v3372_v52 = vor.u32 %v3744_v41, %v3371_v40  ;;  %v3037_v40 = vld [vmem:[%s5742_s2 + $0x90] sm:$0xf0]  ;;  %v3690_v41 = vld [vmem:[%s5742_s2 + $0x184] sm:$0xf] }
  0x8c   :  { %1810 = vmatpush.bf16.msra.mxu0 %v3052_v58  ;;  %v3702_v58 = vld [vmem:[%s5742_s2 + $0x1e4] sm:$0xf] }
  0x8d   :  { %1823 = vmatpush.bf16.msra.mxu1 %v3180_v59  ;;  %v2972_v59 = vor.u32 %v3644_v44, %v2971_v42  ;;  %v3440_v42 = vor.u32 %v3758_v34, %v3437_v35  ;;  %v3722_v44 = vld [vmem:[%s5742_s2 + $0x284] sm:$0xf] }
  0x8e   :  { %1836 = vmatpush.bf16.msra.mxu2 %v3308_v19  ;;  %v3213_v19 = vld [vmem:[%s5742_s2 + $0x1f0] sm:$0xf0]  ;;  %v3706_v34 = vld [vmem:[%s5742_s2 + $0x204] sm:$0xf] }
  0x8f   :  { %1849 = vmatpush.bf16.msra.mxu3 %v3436_v22  ;;  %v3100_v22 = vor.u32 %v3676_v46, %v3099_v45  ;;  %v3216_v5 = vor.u32 %v3702_v58, %v3213_v19  ;;  %v3293_v45 = vld [vmem:[%s5742_s2 + $0x290] sm:$0xf0]  ;;  %v3754_v46 = vld [vmem:[%s5742_s2 + $0x384] sm:$0xf] }
  0x90   :  { %1811 = vmatpush.bf16.msra.mxu0 %v3036_v2  ;;  %v3356_v2 = vor.u32 %v3740_v54, %v3355_v53  ;;  %v3296_v50 = vor.u32 %v3722_v44, %v3293_v45  ;;  %v3686_v53 = vld [vmem:[%s5742_s2 + $0x164] sm:$0xf]  ;;  %v3219_v44 = vld [vmem:[%s5742_s2 + $0x1e8] sm:$0xf] }
  0x91   :  { %1824 = vmatpush.bf16.msra.mxu1 %v3164_v3  ;;  %v3088_v3 = vor.u32 %v3670_v56, %v3085_v57  ;;  %v3718_v56 = vld [vmem:[%s5742_s2 + $0x264] sm:$0xf]  ;;  %v3277_v57 = vld [vmem:[%s5742_s2 + $0x270] sm:$0xf0] }
  0x92   :  { %1837 = vmatpush.bf16.msra.mxu2 %v3292_v4  ;;  %v1159_v4 = vunpack.c.h.b16 %v33_v55  ;;  %v3149_v55 = vld [vmem:[%s5742_s2 + $0x170] sm:$0xf0]  ;;  %v3750_v58 = vld [vmem:[%s5742_s2 + $0x364] sm:$0xf]  ;;  %v3280_v61 = vor.u32 %v3718_v56, %v3277_v57 }
  0x93   :  { %1850 = vmatpush.bf16.msra.mxu3 %v3420_v8  ;;  %v3069_v8 = vld [vmem:[%s5742_s2 + $0xd0] sm:$0xf0]  ;;  %v3152_v60 = vor.u32 %v3686_v53, %v3149_v55  ;;  %v3475_v53 = vld [vmem:[%s5742_s2 + $0x3e8] sm:$0xf] }
  0x94   :  { %1812 = vmatpush.bf16.msra.mxu0 %v3020_v14  ;;  %v3325_v14 = vld [vmem:[%s5742_s2 + $0x2d0] sm:$0xf0]  ;;  %v5044_v23 = vpack.c.b16 %v1159_v4, %v1159_v4 }
  0x95   :  { %1825 = vmatpush.bf16.msra.mxu1 %v3148_v15  ;;  %v5034_v15 = vpack.c.b16 %v1158_v0, %v1158_v0  ;;  %v3328_v26 = vor.u32 %v3730_v13, %v3325_v14  ;;  %v3714_v0 = vld [vmem:[%s5742_s2 + $0x244] sm:$0xf]  ;;  %v3117_v14 = vld [vmem:[%s5742_s2 + $0x130] sm:$0xf0] }
  0x96   :  { %1838 = vmatpush.bf16.msra.mxu2 %v3276_v16  ;;  %v5036_v16 = vpack.c.b16 %v1157_v1, %v1157_v1  ;;  %v3261_v1 = vld [vmem:[%s5742_s2 + $0x250] sm:$0xf0] }
  0x97   :  { %1851 = vmatpush.bf16.msra.mxu3 %v3404_v24  ;;  %v3072_v24 = vor.u32 %v3666_v7, %v3069_v8  ;;  %v3264_v7 = vor.u32 %v3714_v0, %v3261_v1  ;;  %v3646_v8 = vld [vmem:[%s5742_s2 + $0x24] sm:$0xf]  ;;  %v3765_v0 = vld [vmem:[%s5742_s2 + $0x3d4] sm:$0xf0] }
  0x98   :  { %1813 = vmatpush.bf16.msra.mxu0 %v3004_v30  ;;  %v3456_v30 = vor.u32 %v3762_v17, %v3453_v21  ;;  %v3710_v17 = vld [vmem:[%s5742_s2 + $0x224] sm:$0xf]  ;;  %v3245_v21 = vld [vmem:[%s5742_s2 + $0x230] sm:$0xf0] }
  0x99   :  { %1826 = vmatpush.bf16.msra.mxu1 %v3132_v31  ;;  %v3181_v31 = vld [vmem:[%s5742_s2 + $0x1b0] sm:$0xf0] }
  0x9a   :  { %1839 = vmatpush.bf16.msra.mxu2 %v3260_v32  ;;  %v3726_v32 = vld [vmem:[%s5742_s2 + $0x2a4] sm:$0xf]  ;;  %v3184_v37 = vor.u32 %v3694_v29, %v3181_v31  ;;  %v2973_v29 = vld [vmem:[%s5742_s2 + $0x10] sm:$0xf0]  ;;  %v3248_v31 = vor.u32 %v3710_v17, %v3245_v21  ;;  %v3761_v17 = vld [vmem:[%s5742_s2 + $0x3b4] sm:$0xf0] }
  0x9b   :  { %1852 = vmatpush.bf16.msra.mxu3 %v3388_v36  ;;  %v3056_v36 = vor.u32 %v3662_v27, %v3053_v28  ;;  %v3312_v38 = vor.u32 %v3726_v32, %v3309_v33  ;;  %v2992_v27 = vor.u32 %v3646_v8, %v2989_v9  ;;  %v3642_v28 = vld [vmem:[%s5742_s2 + $0x4] sm:$0xf]  ;;  %v3101_v33 = vld [vmem:[%s5742_s2 + $0x110] sm:$0xf0]  ;;  %v3187_v8 = vld [vmem:[%s5742_s2 + $0x1a8] sm:$0xf] }
  0x9c   :  { %1814 = vmatpush.bf16.msra.mxu0 %v2988_v43  ;;  %v3165_v43 = vld [vmem:[%s5742_s2 + $0x190] sm:$0xf0]  ;;  %v3674_v32 = vld [vmem:[%s5742_s2 + $0x104] sm:$0xf]  ;;  %v2976_v45 = vor.u32 %v3642_v28, %v2973_v29  ;;  %v3171_v28 = vld [vmem:[%s5742_s2 + $0x188] sm:$0xf] }
  0x9d   :  { %1827 = vmatpush.bf16.msra.mxu1 %v3116_v47  ;;  %v3421_v47 = vld [vmem:[%s5742_s2 + $0x390] sm:$0xf0]  ;;  %v3168_v49 = vor.u32 %v3690_v41, %v3165_v43  ;;  %v3673_v43 = vld [vmem:[%s5742_s2 + $0xf4] sm:$0xf0] }
  0x9e   :  { %1840 = vmatpush.bf16.msra.mxu2 %v3244_v48  ;;  %v3040_v48 = vor.u32 %v3658_v39, %v3037_v40  ;;  %v3424_v54 = vor.u32 %v3754_v46, %v3421_v47  ;;  %v3357_v39 = vld [vmem:[%s5742_s2 + $0x310] sm:$0xf0]  ;;  %v3705_v46 = vld [vmem:[%s5742_s2 + $0x1f4] sm:$0xf0]  ;;  %v3347_v47 = vld [vmem:[%s5742_s2 + $0x2e8] sm:$0xf] }
  0x9f   :  { %1853 = vmatpush.bf16.msra.mxu3 %v3372_v52  ;;  %v3021_v52 = vld [vmem:[%s5742_s2 + $0x70] sm:$0xf0] }
  0xa0   :  { %1815 = vmatpush.bf16.msra.mxu0 %v2972_v59  ;;  %v3405_v59 = vld [vmem:[%s5742_s2 + $0x370] sm:$0xf0]  ;;  %v3024_v19 = vor.u32 %v3654_v51, %v3021_v52  ;;  %v3104_v51 = vor.u32 %v3674_v32, %v3101_v33  ;;  %v3725_v32 = vld [vmem:[%s5742_s2 + $0x294] sm:$0xf0]  ;;  %v3427_v33 = vld [vmem:[%s5742_s2 + $0x388] sm:$0xf] }
  0xa1   :  { %1828 = vmatpush.bf16.msra.mxu1 %v3100_v22  ;;  %v3005_v22 = vld [vmem:[%s5742_s2 + $0x50] sm:$0xf0]  ;;  %v3408_v62 = vor.u32 %v3750_v58, %v3405_v59  ;;  %v3220_v58 = vor.u32 %v3705_v46, %v3219_v44  ;;  %v3689_v44 = vld [vmem:[%s5742_s2 + $0x174] sm:$0xf0] }
  0xa2   :  { %1841 = vmatpush.bf16.msra.mxu2 %v3228_v20  ;;  %v3682_v20 = vld [vmem:[%s5742_s2 + $0x144] sm:$0xf]  ;;  %v3008_v4 = vor.u32 %v3650_v18, %v3005_v22  ;;  %v3701_v22 = vld [vmem:[%s5742_s2 + $0x1d4] sm:$0xf0] }
  0xa3   :  { %1854 = vmatpush.bf16.msra.mxu3 %v3356_v2  ;;  %1816 = vmatmul.bf16.vlgmr.msra.gmra.mxu0 %v5023_v11  ;;  %v3746_v2 = vld [vmem:[%s5742_s2 + $0x344] sm:$0xf]  ;;  %v3721_v46 = vld [vmem:[%s5742_s2 + $0x274] sm:$0xf0] }
  0xa4   :  { %1860 = vmatpush.bf16.msrb.mxu0 %v3088_v3  ;;  %1829 = vmatmul.bf16.vlgmr.msra.gmra.mxu1 %v5036_v16  ;;  %v3389_v3 = vld [vmem:[%s5742_s2 + $0x350] sm:$0xf0] }
  0xa5   :  { %1873 = vmatpush.bf16.msrb.mxu1 %v3216_v5  ;;  %1842 = vmatmul.bf16.vlgmr.msra.gmra.mxu2 %v5034_v15  ;;  %v968_v12 = vpop.f32.mrf.mxu1  ;;  %v3392_v13 = vor.u32 %v3746_v2, %v3389_v3 }
  0xa6   :  { %1886 = vmatpush.bf16.msrb.mxu2 %v3344_v6  ;;  %1855 = vmatmul.bf16.vlgmr.msra.gmra.mxu3 %v5044_v23  ;;  %v955_v5 = vpop.f32.mrf.mxu0  ;;  %v3136_v6 = vor.u32 %v3682_v20, %v3133_v63  ;;  %v3331_v20 = vld [vmem:[%s5742_s2 + $0x2c8] sm:$0xf] }
  0xa7   :  { %1899 = vmatpush.bf16.msrb.mxu3 %v3472_v10  ;;  %v3678_v10 = vld [vmem:[%s5742_s2 + $0x124] sm:$0xf]  ;;  %v3459_v63 = vld [vmem:[%s5742_s2 + $0x3c8] sm:$0xf] }
  0xa8   :  { %1861 = vmatpush.bf16.msrb.mxu0 %v3072_v24  ;;  %v969_v24 = vadd.f32 %v968_v12, %v955_v5  ;;  %v3460_v9 = vor.u32 %v3765_v0, %v3459_v63  ;;  %v3315_v12 = vld [vmem:[%s5742_s2 + $0x2a8] sm:$0xf] }
  0xa9   :  { %1874 = vmatpush.bf16.msrb.mxu1 %v3200_v25  ;;  %v3742_v25 = vld [vmem:[%s5742_s2 + $0x324] sm:$0xf]  ;;  %v994_v41 = vpop.f32.mrf.mxu3 }
  0xaa   :  { %1887 = vmatpush.bf16.msrb.mxu2 %v3328_v26  ;;  %v3373_v26 = vld [vmem:[%s5742_s2 + $0x330] sm:$0xf0]  ;;  %v981_v35 = vpop.f32.mrf.mxu2 }
  0xab   :  { %1900 = vmatpush.bf16.msrb.mxu3 %v3456_v30  ;;  %v3120_v30 = vor.u32 %v3678_v10, %v3117_v14  ;;  %v982_v40 = vadd.f32 %v981_v35, %v969_v24  ;;  %v3697_v10 = vld [vmem:[%s5742_s2 + $0x1b4] sm:$0xf0]  ;;  %v3443_v14 = vld [vmem:[%s5742_s2 + $0x3a8] sm:$0xf] }
  0xac   :  { %1862 = vmatpush.bf16.msrb.mxu0 %v3056_v36  ;;  %v3376_v36 = vor.u32 %v3742_v25, %v3373_v26  ;;  %v3188_v24 = vor.u32 %v3697_v10, %v3187_v8  ;;  %v3043_v26 = vld [vmem:[%s5742_s2 + $0x88] sm:$0xf]  ;;  %v3444_v29 = vor.u32 %v3761_v17, %v3443_v14  ;;  %v3681_v8 = vld [vmem:[%s5742_s2 + $0x134] sm:$0xf0] }
  0xad   :  { %1875 = vmatpush.bf16.msrb.mxu1 %v3184_v37  ;;  %v3229_v37 = vld [vmem:[%s5742_s2 + $0x210] sm:$0xf0]  ;;  %v970_v55 = vpop.f32.mrf.mxu1  ;;  %v3713_v10 = vld [vmem:[%s5742_s2 + $0x234] sm:$0xf0]  ;;  %v2979_v17 = vld [vmem:[%s5742_s2 + $0x8] sm:$0xf] }
  0xae   :  { %1888 = vmatpush.bf16.msrb.mxu2 %v3312_v38  ;;  %v3738_v38 = vld [vmem:[%s5742_s2 + $0x304] sm:$0xf]  ;;  %v3232_v52 = vor.u32 %v3706_v34, %v3229_v37  ;;  %v3757_v34 = vld [vmem:[%s5742_s2 + $0x394] sm:$0xf0] }
  0xaf   :  { %1901 = vmatpush.bf16.msrb.mxu3 %v3440_v42  ;;  %v3091_v42 = vld [vmem:[%s5742_s2 + $0xe8] sm:$0xf]  ;;  %v3360_v56 = vor.u32 %v3738_v38, %v3357_v39  ;;  %v3653_v55 = vld [vmem:[%s5742_s2 + $0x54] sm:$0xf0] }
  0xb0   :  { %1863 = vmatpush.bf16.msrb.mxu0 %v3040_v48  ;;  %v3737_v48 = vld [vmem:[%s5742_s2 + $0x2f4] sm:$0xf0]  ;;  %v3092_v57 = vor.u32 %v3673_v43, %v3091_v42  ;;  %v3027_v39 = vld [vmem:[%s5742_s2 + $0x68] sm:$0xf]  ;;  %v3428_v43 = vor.u32 %v3757_v34, %v3427_v33 }
  0xb1   :  { %1876 = vmatpush.bf16.msrb.mxu1 %v3168_v49  ;;  %v5212_v49 = vadd.f32 %v994_v41, %v982_v40  ;;  %v3348_v59 = vor.u32 %v3737_v48, %v3347_v47  ;;  %v996_v3 = vpop.f32.mrf.mxu3  ;;  %v3657_v40 = vld [vmem:[%s5742_s2 + $0x74] sm:$0xf0]  ;;  %v3155_v41 = vld [vmem:[%s5742_s2 + $0x168] sm:$0xf] }
  0xb2   :  { %1889 = vmatpush.bf16.msrb.mxu2 %v3296_v50  ;;  %v957_v50 = vpop.f32.mrf.mxu0  ;;  %v983_v1 = vpop.f32.mrf.mxu2  ;;  %v3411_v48 = vld [vmem:[%s5742_s2 + $0x368] sm:$0xf]  ;;  %v3741_v33 = vld [vmem:[%s5742_s2 + $0x314] sm:$0xf0] }
  0xb3   :  { %1902 = vmatpush.bf16.msrb.mxu3 %v3424_v54  ;;  %v3769_v54 = vld [vmem:[%s5742_s2 + $0x3f4] sm:$0xf0]  ;;  %v2995_v3 = vld [vmem:[%s5742_s2 + $0x28] sm:$0xf] }
  0xb4   :  { %1864 = vmatpush.bf16.msrb.mxu0 %v3024_v19  ;;  %v3075_v19 = vld [vmem:[%s5742_s2 + $0xc8] sm:$0xf]  ;;  %v3476_v18 = vor.u32 %v3769_v54, %v3475_v53  ;;  %v3753_v50 = vld [vmem:[%s5742_s2 + $0x374] sm:$0xf0] }
  0xb5   :  { %1877 = vmatpush.bf16.msrb.mxu1 %v3152_v60  ;;  %v3669_v60 = vld [vmem:[%s5742_s2 + $0xd4] sm:$0xf0]  ;;  %v3011_v54 = vld [vmem:[%s5742_s2 + $0x48] sm:$0xf] }
  0xb6   :  { %1890 = vmatpush.bf16.msrb.mxu2 %v3280_v61  ;;  %v3203_v61 = vld [vmem:[%s5742_s2 + $0x1c8] sm:$0xf]  ;;  %v3076_v2 = vor.u32 %v3669_v60, %v3075_v19  ;;  %v3717_v60 = vld [vmem:[%s5742_s2 + $0x254] sm:$0xf0] }
  0xb7   :  { %1903 = vmatpush.bf16.msrb.mxu3 %v3408_v62  ;;  %v3733_v62 = vld [vmem:[%s5742_s2 + $0x2d4] sm:$0xf0]  ;;  %v3267_v19 = vld [vmem:[%s5742_s2 + $0x248] sm:$0xf] }
  0xb8   :  { %1865 = vmatpush.bf16.msrb.mxu0 %v3008_v4  ;;  %v3204_v4 = vor.u32 %v3701_v22, %v3203_v61  ;;  %v3332_v5 = vor.u32 %v3733_v62, %v3331_v20  ;;  %v3395_v22 = vld [vmem:[%s5742_s2 + $0x348] sm:$0xf]  ;;  %v3749_v20 = vld [vmem:[%s5742_s2 + $0x354] sm:$0xf0]  ;;  %v3012_v62 = vor.u32 %v3653_v55, %v3011_v54  ;;  %v3205_v55 = vld [vmem:[%s5742_s2 + $0x1d8] sm:$0xf0] }
  0xb9   :  { %1878 = vmatpush.bf16.msrb.mxu1 %v3136_v6  ;;  %v3059_v6 = vld [vmem:[%s5742_s2 + $0xa8] sm:$0xf] }
  0xba   :  { %1891 = vmatpush.bf16.msrb.mxu2 %v3264_v7  ;;  %v3665_v7 = vld [vmem:[%s5742_s2 + $0xb4] sm:$0xf0] }
  0xbb   :  { %1904 = vmatpush.bf16.msrb.mxu3 %v3392_v13  ;;  %v3729_v13 = vld [vmem:[%s5742_s2 + $0x2b4] sm:$0xf0]  ;;  %v3060_v21 = vor.u32 %v3665_v7, %v3059_v6  ;;  %v3396_v7 = vor.u32 %v3749_v20, %v3395_v22  ;;  %v3061_v22 = vld [vmem:[%s5742_s2 + $0xb8] sm:$0xf0]  ;;  %v3695_v20 = vld [vmem:[%s5742_s2 + $0x1ac] sm:$0xf] }
  0xbc   :  { %1866 = vmatpush.bf16.msrb.mxu0 %v2992_v27  ;;  %v3316_v25 = vor.u32 %v3729_v13, %v3315_v12  ;;  %v3661_v27 = vld [vmem:[%s5742_s2 + $0x94] sm:$0xf0]  ;;  %v3379_v12 = vld [vmem:[%s5742_s2 + $0x328] sm:$0xf] }
  0xbd   :  { %1879 = vmatpush.bf16.msrb.mxu1 %v3120_v30  ;;  %v3693_v30 = vld [vmem:[%s5742_s2 + $0x194] sm:$0xf0]  ;;  %v3044_v35 = vor.u32 %v3661_v27, %v3043_v26  ;;  %v3107_v26 = vld [vmem:[%s5742_s2 + $0x108] sm:$0xf] }
  0xbe   :  { %1892 = vmatpush.bf16.msrb.mxu2 %v3248_v31  ;;  %v3299_v31 = vld [vmem:[%s5742_s2 + $0x288] sm:$0xf]  ;;  %v3172_v37 = vor.u32 %v3693_v30, %v3171_v28  ;;  %v3745_v13 = vld [vmem:[%s5742_s2 + $0x334] sm:$0xf0] }
  0xbf   :  { %1905 = vmatpush.bf16.msrb.mxu3 %v3376_v36  ;;  %v3300_v38 = vor.u32 %v3725_v32, %v3299_v31  ;;  %v3677_v27 = vld [vmem:[%s5742_s2 + $0x114] sm:$0xf0]  ;;  %v3235_v28 = vld [vmem:[%s5742_s2 + $0x208] sm:$0xf]  ;;  %v3380_v30 = vor.u32 %v3745_v13, %v3379_v12  ;;  %v3173_v13 = vld [vmem:[%s5742_s2 + $0x198] sm:$0xf0] }
  0xc0   :  { %1867 = vmatpush.bf16.msrb.mxu0 %v2976_v45  ;;  %v1007_v36 = vpop.f32.mrf.mxu0  ;;  %v3283_v45 = vld [vmem:[%s5742_s2 + $0x268] sm:$0xf]  ;;  %v3709_v31 = vld [vmem:[%s5742_s2 + $0x214] sm:$0xf0] }
  0xc1   :  { %1880 = vmatpush.bf16.msrb.mxu1 %v3104_v51  ;;  %v1020_v42 = vpop.f32.mrf.mxu1  ;;  %v3028_v51 = vor.u32 %v3657_v40, %v3027_v39  ;;  %v3284_v53 = vor.u32 %v3721_v46, %v3283_v45  ;;  %v3363_v32 = vld [vmem:[%s5742_s2 + $0x308] sm:$0xf]  ;;  %v3221_v39 = vld [vmem:[%s5742_s2 + $0x1f8] sm:$0xf0]  ;;  %v3735_v40 = vld [vmem:[%s5742_s2 + $0x2ec] sm:$0xf] }
  0xc2   :  { %1893 = vmatpush.bf16.msrb.mxu2 %v3232_v52  ;;  %v1021_v47 = vadd.f32 %v1020_v42, %v1007_v36  ;;  %v3156_v52 = vor.u32 %v3689_v44, %v3155_v41  ;;  %v3093_v36 = vld [vmem:[%s5742_s2 + $0xf8] sm:$0xf0]  ;;  %v3108_v42 = vor.u32 %v3677_v27, %v3107_v26  ;;  %v3767_v44 = vld [vmem:[%s5742_s2 + $0x3ec] sm:$0xf]  ;;  %v3364_v46 = vor.u32 %v3741_v33, %v3363_v32 }
  0xc3   :  { %1906 = vmatpush.bf16.msrb.mxu3 %v3360_v56  ;;  %1868 = vmatmul.bf16.vlgmr.msrb.gmra.mxu0 %v5023_v11  ;;  %v3139_v56 = vld [vmem:[%s5742_s2 + $0x148] sm:$0xf]  ;;  %v3349_v41 = vld [vmem:[%s5742_s2 + $0x2f8] sm:$0xf0] }
  0xc4   :  { %1912 = vmatpush.bf16.msra.mxu0 %v3092_v57  ;;  %1881 = vmatmul.bf16.vlgmr.msrb.gmra.mxu1 %v5036_v16  ;;  %v3477_v45 = vld [vmem:[%s5742_s2 + $0x3f8] sm:$0xf0] }
  0xc5   :  { %1925 = vmatpush.bf16.msra.mxu1 %v3220_v58  ;;  %1894 = vmatmul.bf16.vlgmr.msrb.gmra.mxu2 %v5034_v15  ;;  %v3412_v58 = vor.u32 %v3753_v50, %v3411_v48  ;;  %v3352_v50 = vor.u32 %v3735_v40, %v3349_v41  ;;  %v3480_v54 = vor.u32 %v3767_v44, %v3477_v45  ;;  %v3013_v44 = vld [vmem:[%s5742_s2 + $0x58] sm:$0xf0]  ;;  %v3683_v45 = vld [vmem:[%s5742_s2 + $0x14c] sm:$0xf] }
  0xc6   :  { %1938 = vmatpush.bf16.msra.mxu2 %v3348_v59  ;;  %1907 = vmatmul.bf16.vlgmr.msrb.gmra.mxu3 %v5044_v23  ;;  %v3685_v59 = vld [vmem:[%s5742_s2 + $0x154] sm:$0xf0] }
  0xc7   :  { %1951 = vmatpush.bf16.msra.mxu3 %v3476_v18  ;;  %v3140_v1 = vor.u32 %v3685_v59, %v3139_v56  ;;  %v3731_v56 = vld [vmem:[%s5742_s2 + $0x2cc] sm:$0xf]  ;;  %v3461_v59 = vld [vmem:[%s5742_s2 + $0x3d8] sm:$0xf0] }
  0xc8   :  { %1913 = vmatpush.bf16.msra.mxu0 %v3076_v2  ;;  %v1033_v57 = vpop.f32.mrf.mxu2  ;;  %v1009_v0 = vpop.f32.mrf.mxu0  ;;  %v3268_v2 = vor.u32 %v3717_v60, %v3267_v19 }
  0xc9   :  { %1926 = vmatpush.bf16.msra.mxu1 %v3204_v4  ;;  %v1034_v61 = vadd.f32 %v1033_v57, %v1021_v47  ;;  %v1046_v18 = vpop.f32.mrf.mxu3  ;;  %v3649_v4 = vld [vmem:[%s5742_s2 + $0x34] sm:$0xf0]  ;;  %v1022_v6 = vpop.f32.mrf.mxu1  ;;  %v3333_v57 = vld [vmem:[%s5742_s2 + $0x2d8] sm:$0xf0] }
  0xca   :  { %1939 = vmatpush.bf16.msra.mxu2 %v3332_v5  ;;  %v3123_v5 = vld [vmem:[%s5742_s2 + $0x128] sm:$0xf]  ;;  %v2996_v14 = vor.u32 %v3649_v4, %v2995_v3  ;;  %v3189_v0 = vld [vmem:[%s5742_s2 + $0x1b8] sm:$0xf0]  ;;  %v3759_v3 = vld [vmem:[%s5742_s2 + $0x3ac] sm:$0xf] }
  0xcb   :  { %1952 = vmatpush.bf16.msra.mxu3 %v3460_v9  ;;  %v5344_v63 = vadd.f32 %v1046_v18, %v1034_v61  ;;  %v3251_v9 = vld [vmem:[%s5742_s2 + $0x228] sm:$0xf]  ;;  %v3336_v61 = vor.u32 %v3731_v56, %v3333_v57  ;;  %v3663_v18 = vld [vmem:[%s5742_s2 + $0xac] sm:$0xf]  ;;  %v3445_v4 = vld [vmem:[%s5742_s2 + $0x3b8] sm:$0xf0]  ;;  %v3192_v6 = vor.u32 %v3695_v20, %v3189_v0 }
  0xcc   :  { %1914 = vmatpush.bf16.msra.mxu0 %v3060_v21  ;;  %v3645_v21 = vld [vmem:[%s5742_s2 + $0x14] sm:$0xf0]  ;;  %v3448_v12 = vor.u32 %v3759_v3, %v3445_v4  ;;  %v3711_v0 = vld [vmem:[%s5742_s2 + $0x22c] sm:$0xf]  ;;  %v3381_v3 = vld [vmem:[%s5742_s2 + $0x338] sm:$0xf0] }
  0xcd   :  { %1927 = vmatpush.bf16.msra.mxu1 %v3188_v24  ;;  %v3124_v24 = vor.u32 %v3681_v8, %v3123_v5  ;;  %v3064_v5 = vor.u32 %v3663_v18, %v3061_v22  ;;  %v3659_v8 = vld [vmem:[%s5742_s2 + $0x8c] sm:$0xf] }
  0xce   :  { %1940 = vmatpush.bf16.msra.mxu2 %v3316_v25  ;;  %v3252_v25 = vor.u32 %v3713_v10, %v3251_v9  ;;  %v3045_v9 = vld [vmem:[%s5742_s2 + $0x98] sm:$0xf0]  ;;  %v3691_v10 = vld [vmem:[%s5742_s2 + $0x18c] sm:$0xf] }
  0xcf   :  { %1953 = vmatpush.bf16.msra.mxu3 %v3444_v29  ;;  %v3176_v27 = vor.u32 %v3691_v10, %v3173_v13  ;;  %v3679_v18 = vld [vmem:[%s5742_s2 + $0x12c] sm:$0xf]  ;;  %v3109_v13 = vld [vmem:[%s5742_s2 + $0x118] sm:$0xf0] }
  0xd0   :  { %1915 = vmatpush.bf16.msra.mxu0 %v3044_v35  ;;  %v1035_v29 = vpop.f32.mrf.mxu2  ;;  %v3671_v35 = vld [vmem:[%s5742_s2 + $0xec] sm:$0xf] }
  0xd1   :  { %1928 = vmatpush.bf16.msra.mxu1 %v3172_v37  ;;  %v1048_v34 = vpop.f32.mrf.mxu3  ;;  %v3703_v37 = vld [vmem:[%s5742_s2 + $0x1ec] sm:$0xf]  ;;  %v3096_v47 = vor.u32 %v3671_v35, %v3093_v36  ;;  %v3285_v36 = vld [vmem:[%s5742_s2 + $0x278] sm:$0xf0] }
  0xd2   :  { %1941 = vmatpush.bf16.msra.mxu2 %v3300_v38  ;;  %v2980_v38 = vor.u32 %v3645_v21, %v2979_v17  ;;  %v3224_v48 = vor.u32 %v3703_v37, %v3221_v39  ;;  %v3301_v17 = vld [vmem:[%s5742_s2 + $0x298] sm:$0xf0]  ;;  %v3755_v21 = vld [vmem:[%s5742_s2 + $0x38c] sm:$0xf] }
  0xd3   :  { %1954 = vmatpush.bf16.msra.mxu3 %v3428_v43  ;;  %v3236_v43 = vor.u32 %v3709_v31, %v3235_v28  ;;  %v3655_v29 = vld [vmem:[%s5742_s2 + $0x6c] sm:$0xf]  ;;  %v3157_v34 = vld [vmem:[%s5742_s2 + $0x178] sm:$0xf0] }
  0xd4   :  { %1916 = vmatpush.bf16.msra.mxu0 %v3028_v51  ;;  %v3667_v51 = vld [vmem:[%s5742_s2 + $0xcc] sm:$0xf]  ;;  %v3413_v39 = vld [vmem:[%s5742_s2 + $0x378] sm:$0xf0] }
  0xd5   :  { %1929 = vmatpush.bf16.msra.mxu1 %v3156_v52  ;;  %v3077_v52 = vld [vmem:[%s5742_s2 + $0xd8] sm:$0xf0]  ;;  %v3687_v31 = vld [vmem:[%s5742_s2 + $0x16c] sm:$0xf] }
  0xd6   :  { %1942 = vmatpush.bf16.msra.mxu2 %v3284_v53  ;;  %v3699_v53 = vld [vmem:[%s5742_s2 + $0x1cc] sm:$0xf]  ;;  %v3080_v19 = vor.u32 %v3667_v51, %v3077_v52  ;;  %v3160_v41 = vor.u32 %v3687_v31, %v3157_v34  ;;  %v3269_v51 = vld [vmem:[%s5742_s2 + $0x258] sm:$0xf0]  ;;  %v3904_v31 = vld [vmem:[%s5744_s5 + $0x30] sm:$0xff] }
  0xd7   :  { %1955 = vmatpush.bf16.msra.mxu3 %v3412_v58  ;;  %v3763_v58 = vld [vmem:[%s5742_s2 + $0x3cc] sm:$0xf]  ;;  %v3208_v60 = vor.u32 %v3699_v53, %v3205_v55  ;;  %v3397_v55 = vld [vmem:[%s5742_s2 + $0x358] sm:$0xf0] }
  0xd8   :  { %1917 = vmatpush.bf16.msra.mxu0 %v3012_v62  ;;  %v3464_v62 = vor.u32 %v3763_v58, %v3461_v59  ;;  %v3719_v35 = vld [vmem:[%s5742_s2 + $0x26c] sm:$0xf] }
  0xd9   :  { %1930 = vmatpush.bf16.msra.mxu1 %v3140_v1  ;;  %v3727_v1 = vld [vmem:[%s5742_s2 + $0x2ac] sm:$0xf] }
  0xda   :  { %1943 = vmatpush.bf16.msra.mxu2 %v3268_v2  ;;  %v3317_v2 = vld [vmem:[%s5742_s2 + $0x2b8] sm:$0xf0] }
  0xdb   :  { %1956 = vmatpush.bf16.msra.mxu3 %v3396_v7  ;;  %v3320_v7 = vor.u32 %v3727_v1, %v3317_v2  ;;  %v3253_v1 = vld [vmem:[%s5742_s2 + $0x238] sm:$0xf0]  ;;  %v3743_v2 = vld [vmem:[%s5742_s2 + $0x32c] sm:$0xf] }
  0xdc   :  { %1918 = vmatpush.bf16.msra.mxu0 %v2996_v14  ;;  %v3723_v14 = vld [vmem:[%s5742_s2 + $0x28c] sm:$0xf] }
  0xdd   :  { %1931 = vmatpush.bf16.msra.mxu1 %v3124_v24  ;;  %v3429_v24 = vld [vmem:[%s5742_s2 + $0x398] sm:$0xf0]  ;;  %v3304_v28 = vor.u32 %v3723_v14, %v3301_v17  ;;  %v3707_v14 = vld [vmem:[%s5742_s2 + $0x20c] sm:$0xf] }
  0xde   :  { %1944 = vmatpush.bf16.msra.mxu2 %v3252_v25  ;;  %v3048_v25 = vor.u32 %v3659_v8, %v3045_v9  ;;  %v3432_v33 = vor.u32 %v3755_v21, %v3429_v24  ;;  %v2981_v8 = vld [vmem:[%s5742_s2 + $0x18] sm:$0xf0]  ;;  %v3675_v9 = vld [vmem:[%s5742_s2 + $0x10c] sm:$0xf] }
  0xdf   :  { %1957 = vmatpush.bf16.msra.mxu3 %v3380_v30  ;;  %v3029_v30 = vld [vmem:[%s5742_s2 + $0x78] sm:$0xf0]  ;;  %v3739_v24 = vld [vmem:[%s5742_s2 + $0x30c] sm:$0xf] }
  0xe0   :  { %1919 = vmatpush.bf16.msra.mxu0 %v2980_v38  ;;  %v1059_v26 = vpop.f32.mrf.mxu0  ;;  %v3751_v38 = vld [vmem:[%s5742_s2 + $0x36c] sm:$0xf]  ;;  %v3032_v40 = vor.u32 %v3655_v29, %v3029_v30  ;;  %v3237_v17 = vld [vmem:[%s5742_s2 + $0x218] sm:$0xf0] }
  0xe1   :  { %1932 = vmatpush.bf16.msra.mxu1 %v3108_v42  ;;  %v1072_v32 = vpop.f32.mrf.mxu1  ;;  %v3288_v42 = vor.u32 %v3719_v35, %v3285_v36  ;;  %v3905_v30 = vld [vmem:[%s5744_s5 + $0x38] sm:$0xff]  ;;  %v3902_v35 = vld [vmem:[%s5744_s5 + $0x20] sm:$0xff] }
  0xe2   :  { %1945 = vmatpush.bf16.msra.mxu2 %v3236_v43  ;;  %v1073_v37 = vadd.f32 %v1072_v32, %v1059_v26  ;;  %v3651_v43 = vld [vmem:[%s5742_s2 + $0x4c] sm:$0xf] }
  0xe3   :  { %1958 = vmatpush.bf16.msra.mxu3 %v3364_v46  ;;  %1920 = vmatmul.bf16.vlgmr.msra.gmra.mxu0 %v5023_v11  ;;  %v3016_v56 = vor.u32 %v3651_v43, %v3013_v44  ;;  %v3903_v32 = vld [vmem:[%s5744_s5 + $0x28] sm:$0xff] }
  0xe4   :  { %1964 = vmatpush.bf16.msrb.mxu0 %v3096_v47  ;;  %1933 = vmatmul.bf16.vlgmr.msra.gmra.mxu1 %v5036_v16  ;;  %v3416_v47 = vor.u32 %v3751_v38, %v3413_v39  ;;  %v3900_v39 = vld [vmem:[%s5744_s5 + $0x10] sm:$0xff] }
  0xe5   :  { %1977 = vmatpush.bf16.msrb.mxu1 %v3224_v48  ;;  %1946 = vmatmul.bf16.vlgmr.msra.gmra.mxu2 %v5034_v15  ;;  %v3141_v48 = vld [vmem:[%s5742_s2 + $0x158] sm:$0xf0] }
  0xe6   :  { %1990 = vmatpush.bf16.msrb.mxu2 %v3352_v50  ;;  %1959 = vmatmul.bf16.vlgmr.msra.gmra.mxu3 %v5044_v23  ;;  %v3715_v50 = vld [vmem:[%s5742_s2 + $0x24c] sm:$0xf]  ;;  %v3144_v59 = vor.u32 %v3683_v45, %v3141_v48  ;;  %v3912_v45 = vld [vmem:[%s5744_s5 + $0x70] sm:$0xff]  ;;  %v3910_v48 = vld [vmem:[%s5744_s5 + $0x60] sm:$0xff] }
  0xe7   :  { %2003 = vmatpush.bf16.msrb.mxu3 %v3480_v54  ;;  %v3747_v54 = vld [vmem:[%s5742_s2 + $0x34c] sm:$0xf] }
  0xe8   :  { %1965 = vmatpush.bf16.msrb.mxu0 %v3080_v19  ;;  %v1085_v46 = vpop.f32.mrf.mxu2  ;;  %v1061_v58 = vpop.f32.mrf.mxu0  ;;  %v3272_v19 = vor.u32 %v3715_v50, %v3269_v51  ;;  %v3400_v20 = vor.u32 %v3747_v54, %v3397_v55  ;;  %v5641_v54 = vld [vmem:[%s5746_s4] sm:$0xf]  ;;  %v3908_v55 = vld [vmem:[%s5744_s5 + $0x50] sm:$0xff] }
  0xe9   :  { %1978 = vmatpush.bf16.msrb.mxu1 %v3208_v60  ;;  %v1086_v52 = vadd.f32 %v1085_v46, %v1073_v37  ;;  %v1098_v53 = vpop.f32.mrf.mxu3  ;;  %v3647_v60 = vld [vmem:[%s5742_s2 + $0x2c] sm:$0xf]  ;;  %v1074_v22 = vpop.f32.mrf.mxu1  ;;  %v3898_v46 = vld [vmem:[%s5744_s5] sm:$0xff] }
  0xea   :  { %1991 = vmatpush.bf16.msrb.mxu2 %v3336_v61  ;;  %v2997_v61 = vld [vmem:[%s5742_s2 + $0x38] sm:$0xf0] }
  0xeb   :  { %2004 = vmatpush.bf16.msrb.mxu3 %v3464_v62  ;;  %v5542_v57 = vadd.f32 %v1098_v53, %v1086_v52  ;;  %v3125_v62 = vld [vmem:[%s5742_s2 + $0x138] sm:$0xf0]  ;;  %v3000_v4 = vor.u32 %v3647_v60, %v2997_v61  ;;  %v2018_v60 = vperm.slane %v5641_v54, 0 }
  0xec   :  { %1966 = vmatpush.bf16.msrb.mxu0 %v3064_v5  ;;  %v3128_v5 = vor.u32 %v3679_v18, %v3125_v62  ;;  %v3909_v52 = vld [vmem:[%s5744_s5 + $0x58] sm:$0xff]  ;;  %v3906_v62 = vld [vmem:[%s5744_s5 + $0x40] sm:$0xff] }
  0xed   :  { %1979 = vmatpush.bf16.msrb.mxu1 %v3192_v6  ;;  %v3256_v6 = vor.u32 %v3711_v0, %v3253_v1  ;;  %v3921_v1 = vld [vmem:[%s5744_s5 + $0xb8] sm:$0xff] }
  0xee   :  { %1992 = vmatpush.bf16.msrb.mxu2 %v3320_v7  ;;  %v3643_v7 = vld [vmem:[%s5742_s2 + $0xc] sm:$0xf] }
  0xef   :  { %2005 = vmatpush.bf16.msrb.mxu3 %v3448_v12  ;;  %v3384_v12 = vor.u32 %v3743_v2, %v3381_v3  ;;  %v2984_v26 = vor.u32 %v3643_v7, %v2981_v8  ;;  %v3918_v7 = vld [vmem:[%s5744_s5 + $0xa0] sm:$0xff] }
  0xf0   :  { %1967 = vmatpush.bf16.msrb.mxu0 %v3048_v25  ;;  %v1087_v10 = vpop.f32.mrf.mxu2  ;;  %v3365_v25 = vld [vmem:[%s5742_s2 + $0x318] sm:$0xf0] }
  0xf1   :  { %1980 = vmatpush.bf16.msrb.mxu1 %v3176_v27  ;;  %v1100_v21 = vpop.f32.mrf.mxu3  ;;  %v3112_v27 = vor.u32 %v3675_v9, %v3109_v13  ;;  %v3368_v29 = vor.u32 %v3739_v24, %v3365_v25  ;;  %v3917_v9 = vld [vmem:[%s5744_s5 + $0x98] sm:$0xff]  ;;  %v3916_v13 = vld [vmem:[%s5744_s5 + $0x90] sm:$0xff]  ;;  %v2019_v25 = vperm.slane %v5641_v54, 1 }
  0xf2   :  { %1993 = vmatpush.bf16.msrb.mxu2 %v3304_v28  ;;  %v3240_v28 = vor.u32 %v3707_v14, %v3237_v17 }
  0xf3   :  { %2006 = vmatpush.bf16.msrb.mxu3 %v3432_v33 }
  0xf4   :  { %1968 = vmatpush.bf16.msrb.mxu0 %v3032_v40 }
  0xf5   :  { %1981 = vmatpush.bf16.msrb.mxu1 %v3160_v41  ;;  %v3899_v41 = vld [vmem:[%s5744_s5 + $0x8] sm:$0xff] }
  0xf6   :  { %1994 = vmatpush.bf16.msrb.mxu2 %v3288_v42  ;;  %v3913_v42 = vld [vmem:[%s5744_s5 + $0x78] sm:$0xff] }
  0xf7   :  { %2007 = vmatpush.bf16.msrb.mxu3 %v3416_v47  ;;  %v3911_v47 = vld [vmem:[%s5744_s5 + $0x68] sm:$0xff] }
  0xf8   :  { %1969 = vmatpush.bf16.msrb.mxu0 %v3016_v56 }
  0xf9   :  { %1982 = vmatpush.bf16.msrb.mxu1 %v3144_v59 }
  0xfa   :  { %1995 = vmatpush.bf16.msrb.mxu2 %v3272_v19 }
  0xfb   :  { %2008 = vmatpush.bf16.msrb.mxu3 %v3400_v20 }
  0xfc   :  { %1970 = vmatpush.bf16.msrb.mxu0 %v3000_v4 }
  0xfd   :  { %1983 = vmatpush.bf16.msrb.mxu1 %v3128_v5  ;;  %v3920_v5 = vld [vmem:[%s5744_s5 + $0xb0] sm:$0xff] }
  0xfe   :  { %1996 = vmatpush.bf16.msrb.mxu2 %v3256_v6  ;;  %v3919_v6 = vld [vmem:[%s5744_s5 + $0xa8] sm:$0xff] }
  0xff   :  { %2009 = vmatpush.bf16.msrb.mxu3 %v3384_v12 }
 0x100   :  { %1971 = vmatpush.bf16.msrb.mxu0 %v2984_v26  ;;  %v1111_v33 = vpop.f32.mrf.mxu0 }
 0x101   :  { %1984 = vmatpush.bf16.msrb.mxu1 %v3112_v27  ;;  %v1124_v34 = vpop.f32.mrf.mxu1  ;;  %v3915_v27 = vld [vmem:[%s5744_s5 + $0x88] sm:$0xff] }
 0x102   :  { %1997 = vmatpush.bf16.msrb.mxu2 %v3240_v28  ;;  %v1125_v36 = vadd.f32 %v1124_v34, %v1111_v33 }
 0x103   :  { %2010 = vmatpush.bf16.msrb.mxu3 %v3368_v29  ;;  %1972 = vmatmul.bf16.vlgmr.msrb.gmra.mxu0 %v5023_v11  ;;  %v3901_v11 = vld [vmem:[%s5744_s5 + $0x18] sm:$0xff] }
 0x104   :  { %2298 = vmatpush.bf16.msra.mxu0 %v3905_v30  ;;  %1985 = vmatmul.bf16.vlgmr.msrb.gmra.mxu1 %v5036_v16  ;;  %v3914_v30 = vld [vmem:[%s5744_s5 + $0x80] sm:$0xff] }
 0x105   :  { %1998 = vmatmul.bf16.vlgmr.msrb.gmra.mxu2 %v5034_v15  ;;  %2311 = vmatpush.bf16.msra.mxu1 %v3913_v42 }
 0x106   :  { %2011 = vmatmul.bf16.vlgmr.msrb.gmra.mxu3 %v5044_v23  ;;  %2324 = vmatpush.bf16.msra.mxu2 %v3921_v1 }
 0x108   :  { %2299 = vmatpush.bf16.msra.mxu0 %v3904_v31  ;;  %v1137_v15 = vpop.f32.mrf.mxu2  ;;  %v1113_v23 = vpop.f32.mrf.mxu0  ;;  %v3929_v31 = vld [vmem:[%s5744_s5 + $0xf8] sm:$0xff] }
 0x109   :  { %v1138_v16 = vadd.f32 %v1137_v15, %v1125_v36  ;;  %v1150_v37 = vpop.f32.mrf.mxu3  ;;  %v1126_v38 = vpop.f32.mrf.mxu1  ;;  %2312 = vmatpush.bf16.msra.mxu1 %v3912_v45  ;;  %2337 = vmatpush.bf16.msra.mxu3 %v3929_v31  ;;  %v3928_v36 = vld [vmem:[%s5744_s5 + $0xf0] sm:$0xff]  ;;  %v3926_v15 = vld [vmem:[%s5744_s5 + $0xe0] sm:$0xff] }
 0x10a   :  { %2325 = vmatpush.bf16.msra.mxu2 %v3920_v5 }
 0x10b   :  { %v5614_v40 = vadd.f32 %v1150_v37, %v1138_v16  ;;  %v3925_v16 = vld [vmem:[%s5744_s5 + $0xd8] sm:$0xff] }
 0x10c   :  { %2300 = vmatpush.bf16.msra.mxu0 %v3903_v32 }
 0x10d   :  { %2313 = vmatpush.bf16.msra.mxu1 %v3911_v47  ;;  %2338 = vmatpush.bf16.msra.mxu3 %v3928_v36 }
 0x10e   :  { %2326 = vmatpush.bf16.msra.mxu2 %v3919_v6 }
 0x110   :  { %2301 = vmatpush.bf16.msra.mxu0 %v3902_v35  ;;  %v1139_v43 = vpop.f32.mrf.mxu2 }
 0x111   :  { %v1152_v44 = vpop.f32.mrf.mxu3  ;;  %2314 = vmatpush.bf16.msra.mxu1 %v3910_v48  ;;  %v3923_v43 = vld [vmem:[%s5744_s5 + $0xc8] sm:$0xff] }
 0x112   :  { %2327 = vmatpush.bf16.msra.mxu2 %v3918_v7 }
 0x114   :  { %2302 = vmatpush.bf16.msra.mxu0 %v3901_v11  ;;  %v3927_v11 = vld [vmem:[%s5744_s5 + $0xe8] sm:$0xff] }
 0x115   :  { %2315 = vmatpush.bf16.msra.mxu1 %v3909_v52  ;;  %2339 = vmatpush.bf16.msra.mxu3 %v3927_v11 }
 0x116   :  { %2328 = vmatpush.bf16.msra.mxu2 %v3917_v9 }
 0x118   :  { %2303 = vmatpush.bf16.msra.mxu0 %v3900_v39  ;;  %v3924_v39 = vld [vmem:[%s5744_s5 + $0xd0] sm:$0xff] }
 0x119   :  { %2316 = vmatpush.bf16.msra.mxu1 %v3908_v55  ;;  %2340 = vmatpush.bf16.msra.mxu3 %v3926_v15 }
 0x11a   :  { %2329 = vmatpush.bf16.msra.mxu2 %v3916_v13  ;;  %v3933_v13 = vld [vmem:[%s5748_s7 + $0x18] sm:$0xff] }
 0x11c   :  { %2304 = vmatpush.bf16.msra.mxu0 %v3899_v41 }
 0x11d   :  { %2341 = vmatpush.bf16.msra.mxu3 %v3925_v16 }
 0x11e   :  { %2330 = vmatpush.bf16.msra.mxu2 %v3915_v27 }
 0x120   :  { %2305 = vmatpush.bf16.msra.mxu0 %v3898_v46  ;;  %v1817_v50 = vpop.f32.mrf.mxu0  ;;  %v2020_v46 = vperm.slane %v5641_v54, 2 }
 0x121   :  { %v1830_v51 = vpop.f32.mrf.mxu1  ;;  %v1818_v53 = vadd.f32 %v1817_v50, %v5212_v49  ;;  %v3907_v49 = vld [vmem:[%s5744_s5 + $0x48] sm:$0xff]  ;;  %2342 = vmatpush.bf16.msra.mxu3 %v3924_v39 }
 0x122   :  { %2317 = vmatpush.bf16.msra.mxu1 %v3907_v49  ;;  %2331 = vmatpush.bf16.msra.mxu2 %v3914_v30 }
 0x123   :  { %v1831_v56 = vadd.f32 %v1830_v51, %v1818_v53 }
 0x125   :  { %2343 = vmatpush.bf16.msra.mxu3 %v3923_v43 }
 0x126   :  { %2318 = vmatpush.bf16.msra.mxu1 %v3906_v62 }
 0x128   :  { %v1843_v58 = vpop.f32.mrf.mxu2  ;;  %v1819_v61 = vpop.f32.mrf.mxu0 }
 0x129   :  { %v1844_v59 = vadd.f32 %v1843_v58, %v1831_v56  ;;  %v1856_v19 = vpop.f32.mrf.mxu3  ;;  %v1832_v18 = vpop.f32.mrf.mxu1 }
 0x12b   :  { %v1857_v22 = vadd.f32 %v1856_v19, %v1844_v59 }
 0x12d   :  { %v2026_v20 = vadd.f32 %v2018_v60, %v1857_v22  ;;  %v2021_v22 = vperm.slane %v5641_v54, 3  ;;  %v3936_v54 = vld [vmem:[%s5748_s7 + $0x30] sm:$0xff] }
 0x12f   :  { %v2030_v0 = vmax.f32 %v2026_v20, 0.0 }
 0x130   :  { %v1845_v2 = vpop.f32.mrf.mxu2 }
 0x131   :  { %v2034_v3 = vpack.c.bf16 %v2030_v0, %v2030_v0  ;;  %v1858_v4 = vpop.f32.mrf.mxu3 }
 0x133   :  { %2306 = vmatmul.bf16.vlgmr.msra.gmra.mxu0 %v2034_v3 }
 0x140   :  { %v1869_v8 = vpop.f32.mrf.mxu0 }
 0x141   :  { %v1882_v10 = vpop.f32.mrf.mxu1  ;;  %v1870_v12 = vadd.f32 %v1869_v8, %v5344_v63 }
 0x143   :  { %v1883_v14 = vadd.f32 %v1882_v10, %v1870_v12  ;;  %v3935_v10 = vld [vmem:[%s5748_s7 + $0x28] sm:$0xff]  ;;  %v3934_v12 = vld [vmem:[%s5748_s7 + $0x20] sm:$0xff] }
 0x148   :  { %v1895_v17 = vpop.f32.mrf.mxu2  ;;  %v1871_v26 = vpop.f32.mrf.mxu0 }
 0x149   :  { %v1896_v21 = vadd.f32 %v1895_v17, %v1883_v14  ;;  %v1908_v24 = vpop.f32.mrf.mxu3  ;;  %v1884_v28 = vpop.f32.mrf.mxu1  ;;  %v3932_v14 = vld [vmem:[%s5748_s7 + $0x10] sm:$0xff]  ;;  %v3931_v17 = vld [vmem:[%s5748_s7 + $0x8] sm:$0xff]  ;;  %v3938_v26 = vld [vmem:[%s5745_s6] ss:$0 sm:$0xff] }
 0x14b   :  { %v1909_v29 = vadd.f32 %v1908_v24, %v1896_v21  ;;  %v3930_v24 = vld [vmem:[%s5748_s7] sm:$0xff] }
 0x14d   :  { %v2027_v63 = vadd.f32 %v2019_v25, %v1909_v29 }
 0x14f   :  { %v2031_v32 = vmax.f32 %v2027_v63, 0.0 }
 0x150   :  { %v1897_v33 = vpop.f32.mrf.mxu2 }
 0x151   :  { %v2035_v34 = vpack.c.bf16 %v2031_v32, %v2031_v32  ;;  %v1910_v35 = vpop.f32.mrf.mxu3 }
 0x153   :  { %2319 = vmatmul.bf16.vlgmr.msra.gmra.mxu1 %v2035_v34  ;;  %v3939_v34 = vld [vmem:[%s5747_s8] ss:$0 sm:$0xff] }
 0x160   :  { %v1921_v23 = vpop.f32.mrf.mxu0 }
 0x161   :  { %v1934_v37 = vpop.f32.mrf.mxu1  ;;  %v1922_v38 = vadd.f32 %v1921_v23, %v5542_v57  ;;  %v3922_v57 = vld [vmem:[%s5744_s5 + $0xc0] sm:$0xff] }
 0x162   :  { %2344 = vmatpush.bf16.msra.mxu3 %v3922_v57 }
 0x163   :  { %v1935_v41 = vadd.f32 %v1934_v37, %v1922_v38 }
 0x168   :  { %v1947_v42 = vpop.f32.mrf.mxu2  ;;  %v1923_v47 = vpop.f32.mrf.mxu0 }
 0x169   :  { %v1948_v44 = vadd.f32 %v1947_v42, %v1935_v41  ;;  %v1960_v45 = vpop.f32.mrf.mxu3  ;;  %v1936_v48 = vpop.f32.mrf.mxu1 }
 0x16b   :  { %v1961_v50 = vadd.f32 %v1960_v45, %v1948_v44 }
 0x16d   :  { %v2028_v51 = vadd.f32 %v2020_v46, %v1961_v50 }
 0x16f   :  { %v2032_v52 = vmax.f32 %v2028_v51, 0.0 }
 0x170   :  { %v1949_v53 = vpop.f32.mrf.mxu2 }
 0x171   :  { %v2036_v55 = vpack.c.bf16 %v2032_v52, %v2032_v52  ;;  %v1962_v56 = vpop.f32.mrf.mxu3 }
 0x173   :  { %2332 = vmatmul.bf16.vlgmr.msra.gmra.mxu2 %v2036_v55 }
 0x180   :  { %v1973_v58 = vpop.f32.mrf.mxu0 }
 0x181   :  { %v1986_v59 = vpop.f32.mrf.mxu1  ;;  %v1974_v19 = vadd.f32 %v1973_v58, %v5614_v40  ;;  %v3937_v40 = vld [vmem:[%s5748_s7 + $0x38] sm:$0xff] }
 0x182   :  { %2420 = vmatpush.bf16.msrb.mxu0 %v3937_v40 }
 0x183   :  { %v1987_v60 = vadd.f32 %v1986_v59, %v1974_v19 }
 0x186   :  { %2421 = vmatpush.bf16.msrb.mxu0 %v3936_v54 }
 0x188   :  { %v1999_v61 = vpop.f32.mrf.mxu2  ;;  %v1975_v20 = vpop.f32.mrf.mxu0 }
 0x189   :  { %v2000_v18 = vadd.f32 %v1999_v61, %v1987_v60  ;;  %v2012_v49 = vpop.f32.mrf.mxu3  ;;  %v1988_v62 = vpop.f32.mrf.mxu1 }
 0x18a   :  { %2422 = vmatpush.bf16.msrb.mxu0 %v3935_v10 }
 0x18b   :  { %v2013_v0 = vadd.f32 %v2012_v49, %v2000_v18 }
 0x18d   :  { %v2029_v1 = vadd.f32 %v2021_v22, %v2013_v0 }
 0x18e   :  { %2423 = vmatpush.bf16.msrb.mxu0 %v3934_v12 }
 0x18f   :  { %v2033_v2 = vmax.f32 %v2029_v1, 0.0 }
 0x190   :  { %v2001_v3 = vpop.f32.mrf.mxu2 }
 0x191   :  { %v2037_v4 = vpack.c.bf16 %v2033_v2, %v2033_v2  ;;  %v2014_v5 = vpop.f32.mrf.mxu3 }
 0x192   :  { %2424 = vmatpush.bf16.msrb.mxu0 %v3933_v13 }
 0x193   :  { %2345 = vmatmul.bf16.vlgmr.msra.gmra.mxu3 %v2037_v4 }
 0x196   :  { %2425 = vmatpush.bf16.msrb.mxu0 %v3932_v14 }
 0x19a   :  { %2426 = vmatpush.bf16.msrb.mxu0 %v3931_v17 }
 0x19e   :  { %2427 = vmatpush.bf16.msrb.mxu0 %v3930_v24 }
 0x1b0   :  { %v2307_v6 = vpop.f32.mrf.mxu0 }
 0x1b1   :  { %v2308_v27 = vadd.f32 %v3938_v26, %v2307_v6 }
 0x1b8   :  { %v2309_v7 = vpop.f32.mrf.mxu0 }
 0x1d0   :  { %v2320_v8 = vpop.f32.mrf.mxu1 }
 0x1d1   :  { %v2321_v28 = vadd.f32 %v2320_v8, %v2308_v27 }
 0x1d8   :  { %v2322_v9 = vpop.f32.mrf.mxu1 }
 0x1f6   :  { %v2333_v21 = vpop.f32.mrf.mxu2 }
 0x1f7   :  { %v2334_v29 = vadd.f32 %v2333_v21, %v2321_v28 }
 0x1fe   :  { %v2335_v25 = vpop.f32.mrf.mxu2 }
 0x216   :  { %v2346_v63 = vpop.f32.mrf.mxu3 }
 0x217   :  { %v2347_v30 = vadd.f32 %v2346_v63, %v2334_v29 }
 0x219   :  { %v2350_v31 = vmax.f32 %v2347_v30, 0.0 }
 0x21b   :  { %v2351_v32 = vpack.c.bf16 %v2350_v31, %v2350_v31 }
 0x21d   :  { %2428 = vmatmul.bf16.vlgmr.msrb.gmra.mxu0 %v2351_v32 }
 0x21e   :  { %v2348_v33 = vpop.f32.mrf.mxu3 }
 0x29a   :  { %v2429_v35 = vpop.f32.mrf.mxu0 }
 0x29b   :  { %v2430_v36 = vadd.f32 %v3939_v34, %v2429_v35 }
 0x29d   :  { %v3641_v11 = vmul.f32 -1.442695, %v2430_v36 }
 0x29f   :  { %3940 = vpow2.f32 %v3641_v11 }
 0x2a2   :  { %v2431_v15 = vpop.f32.mrf.mxu0 }
 0x2a5   :  { %v3941_v16 = vpop.eup %3940 }
 0x2a6   :  { %v2436_v23 = vadd.f32 1.0, %v3941_v16 }
 0x2a8   :  { %3942 = vrcp.f32 %v2436_v23  ;;  %v2448_v41 = vand.u32 2147483648, %v2436_v23  ;;  %v2446_v43 = vand.u32 2147483647, %v2436_v23  ;;  %vm2442_vm1 = vweird.f32 %v2436_v23 }
 0x2aa   :  { %v2449_v45 = vor.u32 1.1754944e-38, %v2448_v41  ;;  %vm2447_vm3 = vcmp.eq.f32.partialorder %v2446_v43, 8.507059e+37 }
 0x2ae   :  { %v3943_v37 = vpop.eup %3942 }
 0x2af   :  { %v2438_v38 = vmul.f32 %v3943_v37, %v2436_v23  ;;  %vm2443_vm0 = vweird.f32 %v3943_v37 }
 0x2b0   :  { %vm2444_vm2 = vmor %vm2442_vm1, %vm2443_vm0 }
 0x2b1   :  { %v2439_v39 = vsub.f32 1.0, %v2438_v38 }
 0x2b3   :  { %v2440_v42 = vmul.f32 %v3943_v37, %v2439_v39 }
 0x2b5   :  { %v2441_v44 = vadd.f32 %v3943_v37, %v2440_v42 }
 0x2b7   :  { %v2445_v46 = vsel %vm2444_vm2, %v3943_v37, %v2441_v44 }
 0x2b8   :  { %v2450_v47 = vsel %vm2447_vm3, %v2449_v45, %v2445_v46 }
 0x2b9   :  { %2452 = vst [vmem:[%s5749_s9] sm:$0xff] %v2450_v47 }

</bundles_post_ra>
